<compile_context>
chip_gen: v7x
topology: tpu7x:2x2x1
jax: 0.10.0
libtpu: 0.0.40
codegen_flags: <defaults>
</compile_context>

<pallas_src>
import jax
import jax.numpy as jnp
from jax import lax
from jax.experimental import pallas as pl
from jax.experimental.pallas import tpu as pltpu

IN_DIM = 300          # GRU input size
HID = 64              # GRU hidden size per direction
HS = 2 * HID          # fused hidden state width [fwd | bwd] = 128
GBLK = 128            # one 128-lane block per gate, holding [fwd 64 | bwd 64]
GCOLS = 3 * GBLK      # 384 gate columns (r | z | n)
FC1 = 32

# per streamed row: 2x f32 gi scratch + 2 inputs x 2 pipeline buffers of bf16 x
_BYTES_PER_ROW = 2 * GCOLS * 4 + 2 * 2 * IN_DIM * 2


# ---------------------------------------------------------------------------
# Kernel
# ---------------------------------------------------------------------------
def _pick_unroll(t_chunk):
    if t_chunk % 4 == 0:
        return 4
    if t_chunk % 2 == 0:
        return 2
    return 1


def _make_kernel(t_chunk, bt, pad, T):
    """Streaming bidirectional-GRU kernel specialized for static (t_chunk, bt, pad, T)."""

    def kernel(x_fwd_ref, x_bwd_ref,
               wih_f_ref, wih_b_ref, gib_f_ref, gib_b_ref,
               whh_ref, bhn_ref,
               w_edge_ref, w_final_ref, fc1_b_ref, fc2_w_ref, fc2_b_ref,
               out_ref,
               gi_f_scr, gi_b_scr, h_scr, e_scr):
        c = pl.program_id(1)                       # time-chunk index (inner axis)
        n_chunk = pl.num_programs(1)

        @pl.when(c == 0)
        def _init():
            h_scr[...] = jnp.zeros_like(h_scr)

        # Hoisted input projection for this chunk (bf16 x bf16 -> f32 on the MXU),
        # off the serial chain.  Weights are zero-padded so fwd gates land in lanes
        # [g*128, g*128+64) and bwd gates in [g*128+64, g*128+128).
        gi_f_scr[...] = (jnp.dot(x_fwd_ref[...], wih_f_ref[...],
                                 preferred_element_type=jnp.float32) + gib_f_ref[...])
        gi_b_scr[...] = (jnp.dot(x_bwd_ref[...], wih_b_ref[...],
                                 preferred_element_type=jnp.float32) + gib_b_ref[...])

        whh = whh_ref[...]            # (128, 384) block-diagonal recurrent weights
        bhn = bhn_ref[...]            # (1, 128)  n-gate hidden bias [fwd | bwd]

        # Peeled edge state: both directions start from h == 0, so the state after
        # the first fwd step (t=0) and the first bwd step (t=T-1) needs only gi:
        #   r = sig(gi_r), z = sig(gi_z), n = tanh(gi_n + r*bhn), h = (1-z)*n.
        @pl.when(c == 0)
        def _edge():
            gi_e = (gi_f_scr[pl.ds(0, bt), :]
                    + gi_b_scr[pl.ds((t_chunk - 1 - pad) * bt, bt), :])
            rz_e = jax.nn.sigmoid(gi_e[:, :2 * GBLK])
            n_e = jnp.tanh(gi_e[:, 2 * GBLK:] + rz_e[:, :GBLK] * bhn)
            e_scr[...] = (1.0 - rz_e[:, GBLK:]) * n_e

        if pad > 0:
            lane_is_fwd = lax.broadcasted_iota(jnp.int32, (1, HS), 1) < HID
            base = c * t_chunk

        # fused fwd+bwd recurrence: one (bt,128)x(128,384) matmul per serial step
        def step(j, h):
            jf = pl.multiple_of(j * bt, 8)                     # fwd local time j
            jb = pl.multiple_of((t_chunk - 1 - j) * bt, 8)     # bwd mirrored time
            gi = gi_f_scr[pl.ds(jf, bt), :] + gi_b_scr[pl.ds(jb, bt), :]    # (bt, 384)
            gh = jnp.dot(h, whh, preferred_element_type=jnp.float32)        # (bt, 384)
            rz = jax.nn.sigmoid(gi[:, :2 * GBLK] + gh[:, :2 * GBLK])        # fused r|z
            r, z = rz[:, :GBLK], rz[:, GBLK:]
            n = jnp.tanh(gi[:, 2 * GBLK:] + r * (gh[:, 2 * GBLK:] + bhn))
            h_new = (1.0 - z) * n + z * h
            if pad > 0:
                # lane-wise mask of time-padded steps (fwd: trailing pad steps,
                # bwd: leading pad steps); trace-time no-op when pad == 0.
                s = base + j
                upd = jnp.where(lane_is_fwd,
                                (s < T).astype(jnp.float32),
                                (s >= pad).astype(jnp.float32))
                h_new = h + (h_new - h) * upd
            return h_new

        h_fin = lax.fori_loop(0, t_chunk, step, h_scr[...],
                              unroll=_pick_unroll(t_chunk))
        h_scr[...] = h_fin

        # Head (fc1 + LeakyReLU + fc2), only at the last chunk.
        # feat = [fwd@0, bwd@0, fwd@T-1, bwd@T-1]; fc1 is re-split in the wrapper so
        # no lane concatenation is needed: feat @ fc1_w == edge @ W_e + final @ W_f.
        @pl.when(c == n_chunk - 1)
        def _head():
            h1 = (jnp.dot(e_scr[...], w_edge_ref[...], preferred_element_type=jnp.float32)
                  + jnp.dot(h_fin, w_final_ref[...], preferred_element_type=jnp.float32)
                  + fc1_b_ref[...])
            h1 = jnp.where(h1 >= 0.0, h1, 0.01 * h1)           # LeakyReLU(0.01)
            out_ref[...] = (jnp.sum(h1 * fc2_w_ref[...], axis=1, keepdims=True)
                            + fc2_b_ref[...])

    return kernel


# ---------------------------------------------------------------------------
# Wrapper helpers
# ---------------------------------------------------------------------------
def _vmem_capacity_bytes():
    try:
        return int(pltpu.get_tpu_info().vmem_capacity_bytes)
    except Exception:
        return 64 * 1024 * 1024          # conservative (v7x per-TensorCore VMEM)


def _batch_tiling(B, bt_max=64):
    """Batch tiles of <= 64 rows (vreg pressure) that are multiples of 16 (bf16 x)."""
    b16 = ((B + 15) // 16) * 16
    n_btiles = max(1, (b16 + bt_max - 1) // bt_max)
    bt = ((((B + n_btiles - 1) // n_btiles) + 15) // 16) * 16
    return n_btiles, bt, n_btiles * bt


def _pick_time_chunk(T, bt, max_rows):
    cap = max(1, min(T, max_rows // bt))
    if T <= cap:
        return T
    # prefer a divisor of T close to the cap -> no time padding / masking needed
    for c in range(cap, max(cap // 2, 1), -1):
        if T % c == 0:
            return c
    return cap                            # ragged tail handled by in-kernel masking


def _fuse_params(p):
    """Gate-block-aligned, zero-padded / block-diagonal weights (built once)."""
    H = HID
    f32 = jnp.float32

    def place_ih(w, off):             # w: (300, 192) = [r|z|n]; -> (300, 384)
        out = jnp.zeros((IN_DIM, GCOLS), f32)
        for g in range(3):
            out = out.at[:, g * GBLK + off: g * GBLK + off + H].set(w[:, g * H:(g + 1) * H])
        return out

    def place_bias(bih, bhh, off):    # fold b_ih (all gates) + b_hh (r,z) into gi bias
        b = jnp.zeros((1, GCOLS), f32)
        b = b.at[:, 0 * GBLK + off: 0 * GBLK + off + H].set(bih[:, 0:H] + bhh[:, 0:H])
        b = b.at[:, 1 * GBLK + off: 1 * GBLK + off + H].set(bih[:, H:2 * H] + bhh[:, H:2 * H])
        b = b.at[:, 2 * GBLK + off: 2 * GBLK + off + H].set(bih[:, 2 * H:3 * H])
        return b

    def place_hh(w, off):             # w: (64, 192) -> block-diag slot of (128, 384)
        out = jnp.zeros((HS, GCOLS), f32)
        for g in range(3):
            out = out.at[off:off + H, g * GBLK + off: g * GBLK + off + H].set(
                w[:, g * H:(g + 1) * H])
        return out

    # streamed projection weights in bf16 (MXU-native on all generations)
    wih_f = place_ih(p["wih_f"], 0).astype(jnp.bfloat16)
    wih_b = place_ih(p["wih_b"], H).astype(jnp.bfloat16)
    gib_f = place_bias(p["bih_f"], p["bhh_f"], 0)
    gib_b = place_bias(p["bih_b"], p["bhh_b"], H)
    whh = place_hh(p["whh_f"], 0) + place_hh(p["whh_b"], H)
    bhn = jnp.concatenate([p["bhh_f"][:, 2 * H:], p["bhh_b"][:, 2 * H:]], axis=1)  # (1,128)

    # feat layout = [fwd@0 (0:64), bwd@0 (64:128), fwd@T-1 (128:192), bwd@T-1 (192:256)]
    # edge state  = [fwd@0   | bwd@T-1]  -> rows [0:64]   and [192:256] of fc1_w
    # final state = [fwd@T-1 | bwd@0]    -> rows [128:192] and [64:128] of fc1_w
    fc1_w = p["fc1_w"]
    w_edge = jnp.concatenate([fc1_w[0:H], fc1_w[3 * H:4 * H]], axis=0)       # (128, 32)
    w_final = jnp.concatenate([fc1_w[2 * H:3 * H], fc1_w[H:2 * H]], axis=0)  # (128, 32)
    return (wih_f, wih_b, gib_f, gib_b, whh, bhn, w_edge, w_final,
            p["fc1_b"], p["fc2_w"], p["fc2_b"])


def model_row_sel_forward(x, params, t_chunk=None):
    """x: (B, T, 300) float32 (PyTorch batch_first layout). Returns (B, 1)."""
    B, T, _ = x.shape
    n_btiles, bt, bp = _batch_tiling(B)

    cap = _vmem_capacity_bytes()
    if t_chunk is None:
        budget = max(int(0.5 * cap) - 5 * 1024 * 1024, _BYTES_PER_ROW * bt)
        max_rows = min(8192, budget // _BYTES_PER_ROW)
        t_chunk = _pick_time_chunk(T, bt, max_rows)
    n_chunk = -(-T // t_chunk)
    Tp = n_chunk * t_chunk
    pad = Tp - T
    blk_rows = t_chunk * bt

    # bf16 cast fused with the pad / (btile, time, row)-major relayout pre-pass.
    # TODO(synk): for very long T fold this pre-pass into a strided-DMA projection
    #   stage instead of a separate XLA pass over x.
    x_tm = (jnp.pad(x.astype(jnp.bfloat16), ((0, bp - B), (0, pad), (0, 0)))
            .reshape(n_btiles, bt, Tp, IN_DIM)
            .transpose(0, 2, 1, 3)
            .reshape(n_btiles * Tp * bt, IN_DIM))

    fused = _fuse_params(params)

    w_specs = [pl.BlockSpec(a.shape, lambda b, c: (0, 0)) for a in fused]
    in_specs = [
        # fwd stream: time-chunk c of batch tile b
        pl.BlockSpec((blk_rows, IN_DIM), lambda b, c: (b * n_chunk + c, 0)),
        # bwd stream: mirrored time-chunk of batch tile b
        pl.BlockSpec((blk_rows, IN_DIM), lambda b, c: (b * n_chunk + (n_chunk - 1 - c), 0)),
    ] + w_specs
    out_specs = pl.BlockSpec((bt, 1), lambda b, c: (b, 0))
    scratch_shapes = [
        pltpu.VMEM((blk_rows, GCOLS), jnp.float32),   # gi, fwd direction, this chunk
        pltpu.VMEM((blk_rows, GCOLS), jnp.float32),   # gi, bwd direction, this chunk
        pltpu.VMEM((bt, HS), jnp.float32),            # running fused hidden state
        pltpu.VMEM((bt, HS), jnp.float32),            # edge state [fwd@0 | bwd@T-1]
    ]

    need = blk_rows * _BYTES_PER_ROW + 3 * 1024 * 1024     # + weights & small scratch
    vmem_limit = int(min(0.9 * cap, max(32 * 1024 * 1024, need + 4 * 1024 * 1024)))

    out = pl.pallas_call(
        _make_kernel(t_chunk, bt, pad, T),
        out_shape=jax.ShapeDtypeStruct((bp, 1), jnp.float32),
        grid=(n_btiles, n_chunk),
        in_specs=in_specs,
        out_specs=out_specs,
        scratch_shapes=scratch_shapes,
        compiler_params=pltpu.CompilerParams(
            dimension_semantics=("parallel", "arbitrary"),
            vmem_limit_bytes=vmem_limit),
    )(x_tm, x_tm, *fused)
    return out[:B]


# ---------------------------------------------------------------------------
# Params + pure-JAX reference
# ---------------------------------------------------------------------------
def init_params(key):
    """Deterministic init mirroring PyTorch shapes (weights stored transposed)."""
    k = jax.random.split(key, 12)
    s_gru = 1.0 / float(HID) ** 0.5
    s_fc1 = 1.0 / float(4 * HID) ** 0.5
    s_fc2 = 1.0 / float(FC1) ** 0.5

    def u(kk, shape, s):
        return jax.random.uniform(kk, shape, jnp.float32, -s, s)

    return {
        "wih_f": u(k[0], (IN_DIM, 3 * HID), s_gru),
        "whh_f": u(k[1], (HID, 3 * HID), s_gru),
        "bih_f": u(k[2], (1, 3 * HID), s_gru),
        "bhh_f": u(k[3], (1, 3 * HID), s_gru),
        "wih_b": u(k[4], (IN_DIM, 3 * HID), s_gru),
        "whh_b": u(k[5], (HID, 3 * HID), s_gru),
        "bih_b": u(k[6], (1, 3 * HID), s_gru),
        "bhh_b": u(k[7], (1, 3 * HID), s_gru),
        "fc1_w": u(k[8], (4 * HID, FC1), s_fc1),
        "fc1_b": u(k[9], (1, FC1), s_fc1),
        "fc2_w": u(k[10], (1, FC1), s_fc2),
        "fc2_b": u(k[11], (1, 1), s_fc2),
    }


def reference_forward(x, p):
    """Pure-JAX (f32) reference of the training-mode PyTorch forward."""
    B, T, _ = x.shape
    H = HID

    def run_dir(wih, whh, bih, bhh, reverse):
        xs = jnp.transpose(x, (1, 0, 2))
        if reverse:
            xs = xs[::-1]
        gi_all = jnp.einsum("tbi,ig->tbg", xs, wih) + bih

        def step(h, gi):
            gh = h @ whh + bhh
            r = jax.nn.sigmoid(gi[:, :H] + gh[:, :H])
            z = jax.nn.sigmoid(gi[:, H:2 * H] + gh[:, H:2 * H])
            n = jnp.tanh(gi[:, 2 * H:] + r * gh[:, 2 * H:])
            h = (1.0 - z) * n + z * h
            return h, h

        _, hs = lax.scan(step, jnp.zeros((B, H), jnp.float32), gi_all)
        if reverse:
            hs = hs[::-1]
        return hs

    hs_f = run_dir(p["wih_f"], p["whh_f"], p["bih_f"], p["bhh_f"], False)
    hs_b = run_dir(p["wih_b"], p["whh_b"], p["bih_b"], p["bhh_b"], True)
    out = jnp.transpose(jnp.concatenate([hs_f, hs_b], axis=-1), (1, 0, 2))
    feat = jnp.concatenate([out[:, 0, :], out[:, -1, :]], axis=1)
    h1 = feat @ p["fc1_w"] + p["fc1_b"]
    h1 = jnp.where(h1 >= 0.0, h1, 0.01 * h1)
    return jnp.sum(h1 * p["fc2_w"], axis=1, keepdims=True) + p["fc2_b"]


if __name__ == "__main__":
    key = jax.random.PRNGKey(0)
    pkey, xkey1, xkey2, xkey3 = jax.random.split(key, 4)
    params = init_params(pkey)

    # Config 1: B=2, T=8, two time-chunks -> streamed, state-carrying grid path.
    x1 = jax.random.normal(xkey1, (2, 8, IN_DIM), jnp.float32)
    out1 = jax.block_until_ready(model_row_sel_forward(x1, params, t_chunk=4))
    ref1 = reference_forward(x1, params)
    assert out1.shape == (2, 1), out1.shape
    assert jnp.allclose(out1, ref1, rtol=2e-2, atol=2e-2), (out1, ref1)

    # Config 2: non-multiple-of-16 batch (padded), auto chunking (single chunk).
    x2 = jax.random.normal(xkey2, (3, 6, IN_DIM), jnp.float32)
    out2 = jax.block_until_ready(model_row_sel_forward(x2, params))
    ref2 = reference_forward(x2, params)
    assert out2.shape == (3, 1), out2.shape
    assert jnp.allclose(out2, ref2, rtol=2e-2, atol=2e-2), (out2, ref2)

    # Config 3: ragged T (7 % 4 != 0) -> time-padded last chunk with masked steps.
    x3 = jax.random.normal(xkey3, (2, 7, IN_DIM), jnp.float32)
    out3 = jax.block_until_ready(model_row_sel_forward(x3, params, t_chunk=4))
    ref3 = reference_forward(x3, params)
    assert out3.shape == (2, 1), out3.shape
    assert jnp.allclose(out3, ref3, rtol=2e-2, atol=2e-2), (out3, ref3)

    print("KERNEL_OK")
</pallas_src>

<mosaic_0001>
module attributes {stable_mosaic.version = 11 : i64} {
  func.func @kernel(%arg0: i32, %arg1: i32, %arg2: memref<64x300xbf16, #tpu.memory_space<vmem>>, %arg3: memref<64x300xbf16, #tpu.memory_space<vmem>>, %arg4: memref<300x384xbf16, #tpu.memory_space<vmem>>, %arg5: memref<300x384xbf16, #tpu.memory_space<vmem>>, %arg6: memref<1x384xf32, #tpu.memory_space<vmem>>, %arg7: memref<1x384xf32, #tpu.memory_space<vmem>>, %arg8: memref<128x384xf32, #tpu.memory_space<vmem>>, %arg9: memref<1x128xf32, #tpu.memory_space<vmem>>, %arg10: memref<128x32xf32, #tpu.memory_space<vmem>>, %arg11: memref<128x32xf32, #tpu.memory_space<vmem>>, %arg12: memref<1x32xf32, #tpu.memory_space<vmem>>, %arg13: memref<1x32xf32, #tpu.memory_space<vmem>>, %arg14: memref<1x1xf32, #tpu.memory_space<vmem>>, %arg15: memref<16x1xf32, #tpu.memory_space<vmem>>, %arg16: memref<64x384xf32, #tpu.memory_space<vmem>>, %arg17: memref<64x384xf32, #tpu.memory_space<vmem>>, %arg18: memref<16x128xf32, #tpu.memory_space<vmem>>, %arg19: memref<16x128xf32, #tpu.memory_space<vmem>>) attributes {dimension_semantics = [#tpu.dimension_semantics<parallel>, #tpu.dimension_semantics<arbitrary>], iteration_bounds = array<i64: 1, 2>, scalar_prefetch = 0 : i64, scratch_operands = 4 : i64, tpu.core_type = #tpu.core_type<tc>, window_params = [{transform_indices = @transform_0, window_bounds = array<i64: 64, 300>}, {transform_indices = @transform_1, window_bounds = array<i64: 64, 300>}, {pipeline_mode = #tpu.pipeline_mode<synchronous>, transform_indices = @transform_2, window_bounds = array<i64: 300, 384>}, {pipeline_mode = #tpu.pipeline_mode<synchronous>, transform_indices = @transform_3, window_bounds = array<i64: 300, 384>}, {pipeline_mode = #tpu.pipeline_mode<synchronous>, transform_indices = @transform_4, window_bounds = array<i64: 1, 384>}, {pipeline_mode = #tpu.pipeline_mode<synchronous>, transform_indices = @transform_5, window_bounds = array<i64: 1, 384>}, {pipeline_mode = #tpu.pipeline_mode<synchronous>, transform_indices = @transform_6, window_bounds = array<i64: 128, 384>}, {pipeline_mode = #tpu.pipeline_mode<synchronous>, transform_indices = @transform_7, window_bounds = array<i64: 1, 128>}, {pipeline_mode = #tpu.pipeline_mode<synchronous>, transform_indices = @transform_8, window_bounds = array<i64: 128, 32>}, {pipeline_mode = #tpu.pipeline_mode<synchronous>, transform_indices = @transform_9, window_bounds = array<i64: 128, 32>}, {pipeline_mode = #tpu.pipeline_mode<synchronous>, transform_indices = @transform_10, window_bounds = array<i64: 1, 32>}, {pipeline_mode = #tpu.pipeline_mode<synchronous>, transform_indices = @transform_11, window_bounds = array<i64: 1, 32>}, {pipeline_mode = #tpu.pipeline_mode<synchronous>, transform_indices = @transform_12, window_bounds = array<i64: 1, 1>}, {transform_indices = @transform_13, window_bounds = array<i64: 16, 1>}]} {
    %c0_i32 = arith.constant 0 : i32
    %0 = arith.cmpi eq, %arg1, %c0_i32 : i32
    %1 = arith.extui %0 : i1 to i32
    %c0_i32_0 = arith.constant 0 : i32
    %2 = arith.cmpi ne, %1, %c0_i32_0 : i32
    scf.if %2 {
      %cst_61 = arith.constant 0.000000e+00 : f32
      %159 = vector.broadcast %cst_61 : f32 to vector<16x128xf32>
      %c0_62 = arith.constant 0 : index
      %c0_63 = arith.constant 0 : index
      %160 = vector.load %arg18[%c0_62, %c0_63] : memref<16x128xf32, #tpu.memory_space<vmem>>, vector<16x128xf32>
      tpu.vector_store %arg18[%c0_62, %c0_63], %159 {strides = array<i32>} : memref<16x128xf32, #tpu.memory_space<vmem>>, vector<16x128xf32>,
    } else {
    }
    %c0 = arith.constant 0 : index
    %c0_1 = arith.constant 0 : index
    %3 = vector.load %arg2[%c0, %c0_1] : memref<64x300xbf16, #tpu.memory_space<vmem>>, vector<64x300xbf16>
    %c0_2 = arith.constant 0 : index
    %c0_3 = arith.constant 0 : index
    %4 = vector.load %arg4[%c0_2, %c0_3] : memref<300x384xbf16, #tpu.memory_space<vmem>>, vector<300x384xbf16>
    %cst = arith.constant dense<0.000000e+00> : vector<64x384xf32>
    %5 = tpu.matmul %3, %4, %cst {dimension_numbers = #tpu.dot_dimension_numbers<[1], [0], [0], [1], [0, 0, 1, 1], [], []>} : vector<64x300xbf16>, vector<300x384xbf16>, vector<64x384xf32> -> vector<64x384xf32>
    %c0_4 = arith.constant 0 : index
    %c0_5 = arith.constant 0 : index
    %6 = vector.load %arg6[%c0_4, %c0_5] : memref<1x384xf32, #tpu.memory_space<vmem>>, vector<1x384xf32>
    %7 = vector.broadcast %6 : vector<1x384xf32> to vector<64x384xf32>
    %8 = arith.addf %5, %7 : vector<64x384xf32>
    %c0_6 = arith.constant 0 : index
    %c0_7 = arith.constant 0 : index
    %9 = vector.load %arg16[%c0_6, %c0_7] : memref<64x384xf32, #tpu.memory_space<vmem>>, vector<64x384xf32>
    tpu.vector_store %arg16[%c0_6, %c0_7], %8 {strides = array<i32>} : memref<64x384xf32, #tpu.memory_space<vmem>>, vector<64x384xf32>,
    %c0_8 = arith.constant 0 : index
    %c0_9 = arith.constant 0 : index
    %10 = vector.load %arg3[%c0_8, %c0_9] : memref<64x300xbf16, #tpu.memory_space<vmem>>, vector<64x300xbf16>
    %c0_10 = arith.constant 0 : index
    %c0_11 = arith.constant 0 : index
    %11 = vector.load %arg5[%c0_10, %c0_11] : memref<300x384xbf16, #tpu.memory_space<vmem>>, vector<300x384xbf16>
    %cst_12 = arith.constant dense<0.000000e+00> : vector<64x384xf32>
    %12 = tpu.matmul %10, %11, %cst_12 {dimension_numbers = #tpu.dot_dimension_numbers<[1], [0], [0], [1], [0, 0, 1, 1], [], []>} : vector<64x300xbf16>, vector<300x384xbf16>, vector<64x384xf32> -> vector<64x384xf32>
    %c0_13 = arith.constant 0 : index
    %c0_14 = arith.constant 0 : index
    %13 = vector.load %arg7[%c0_13, %c0_14] : memref<1x384xf32, #tpu.memory_space<vmem>>, vector<1x384xf32>
    %14 = vector.broadcast %13 : vector<1x384xf32> to vector<64x384xf32>
    %15 = arith.addf %12, %14 : vector<64x384xf32>
    %c0_15 = arith.constant 0 : index
    %c0_16 = arith.constant 0 : index
    %16 = vector.load %arg17[%c0_15, %c0_16] : memref<64x384xf32, #tpu.memory_space<vmem>>, vector<64x384xf32>
    tpu.vector_store %arg17[%c0_15, %c0_16], %15 {strides = array<i32>} : memref<64x384xf32, #tpu.memory_space<vmem>>, vector<64x384xf32>,
    %c0_17 = arith.constant 0 : index
    %c0_18 = arith.constant 0 : index
    %17 = vector.load %arg8[%c0_17, %c0_18] : memref<128x384xf32, #tpu.memory_space<vmem>>, vector<128x384xf32>
    %c0_19 = arith.constant 0 : index
    %c0_20 = arith.constant 0 : index
    %18 = vector.load %arg9[%c0_19, %c0_20] : memref<1x128xf32, #tpu.memory_space<vmem>>, vector<1x128xf32>
    %c0_i32_21 = arith.constant 0 : i32
    %19 = arith.cmpi eq, %arg1, %c0_i32_21 : i32
    %20 = arith.extui %19 : i1 to i32
    %c0_i32_22 = arith.constant 0 : i32
    %21 = arith.cmpi ne, %20, %c0_i32_22 : i32
    scf.if %21 {
      %c0_61 = arith.constant 0 : index
      %c0_62 = arith.constant 0 : index
      %159 = vector.load %arg16[%c0_61, %c0_62] : memref<64x384xf32, #tpu.memory_space<vmem>>, vector<16x384xf32>
      %c48 = arith.constant 48 : index
      %c0_63 = arith.constant 0 : index
      %160 = vector.load %arg17[%c48, %c0_63] : memref<64x384xf32, #tpu.memory_space<vmem>>, vector<16x384xf32>
      %161 = arith.addf %159, %160 : vector<16x384xf32>
      %162 = vector.extract_strided_slice %161 {offsets = [0, 0], sizes = [16, 256], strides = [1, 1]} : vector<16x384xf32> to vector<16x256xf32>
      %163 = arith.negf %162 : vector<16x256xf32>
      %164 = math.exp %163 : vector<16x256xf32>
      %cst_64 = arith.constant 1.000000e+00 : f32
      %165 = vector.broadcast %cst_64 : f32 to vector<16x256xf32>
      %166 = arith.addf %165, %164 : vector<16x256xf32>
      %167 = arith.divf %165, %166 : vector<16x256xf32>
      %168 = vector.extract_strided_slice %161 {offsets = [0, 256], sizes = [16, 128], strides = [1, 1]} : vector<16x384xf32> to vector<16x128xf32>
      %169 = vector.extract_strided_slice %167 {offsets = [0, 0], sizes = [16, 128], strides = [1, 1]} : vector<16x256xf32> to vector<16x128xf32>
      %170 = vector.broadcast %18 : vector<1x128xf32> to vector<16x128xf32>
      %171 = arith.mulf %169, %170 : vector<16x128xf32>
      %172 = arith.addf %168, %171 : vector<16x128xf32>
      %173 = math.tanh %172 : vector<16x128xf32>
      %174 = vector.extract_strided_slice %167 {offsets = [0, 128], sizes = [16, 128], strides = [1, 1]} : vector<16x256xf32> to vector<16x128xf32>
      %cst_65 = arith.constant 1.000000e+00 : f32
      %175 = vector.broadcast %cst_65 : f32 to vector<16x128xf32>
      %176 = arith.subf %175, %174 : vector<16x128xf32>
      %177 = arith.mulf %176, %173 : vector<16x128xf32>
      %c0_66 = arith.constant 0 : index
      %c0_67 = arith.constant 0 : index
      %178 = vector.load %arg19[%c0_66, %c0_67] : memref<16x128xf32, #tpu.memory_space<vmem>>, vector<16x128xf32>
      tpu.vector_store %arg19[%c0_66, %c0_67], %177 {strides = array<i32>} : memref<16x128xf32, #tpu.memory_space<vmem>>, vector<16x128xf32>,
    } else {
    }
    %c0_23 = arith.constant 0 : index
    %c0_24 = arith.constant 0 : index
    %22 = vector.load %arg18[%c0_23, %c0_24] : memref<16x128xf32, #tpu.memory_space<vmem>>, vector<16x128xf32>
    %c0_i32_25 = arith.constant 0 : i32
    %c16_i32 = arith.constant 16 : i32
    %23 = arith.muli %c0_i32_25, %c16_i32 : i32
    %24 = tpu.assume_multiple %23, 8 : i32
    %c3_i32 = arith.constant 3 : i32
    %25 = arith.subi %c3_i32, %c0_i32_25 : i32
    %c16_i32_26 = arith.constant 16 : i32
    %26 = arith.muli %25, %c16_i32_26 : i32
    %27 = tpu.assume_multiple %26, 8 : i32
    %28 = arith.index_cast %24 : i32 to index
    %c0_27 = arith.constant 0 : index
    %29 = vector.load %arg16[%28, %c0_27] : memref<64x384xf32, #tpu.memory_space<vmem>>, vector<16x384xf32>
    %30 = arith.index_cast %27 : i32 to index
    %c0_28 = arith.constant 0 : index
    %31 = vector.load %arg17[%30, %c0_28] : memref<64x384xf32, #tpu.memory_space<vmem>>, vector<16x384xf32>
    %32 = arith.addf %29, %31 : vector<16x384xf32>
    %cst_29 = arith.constant dense<0.000000e+00> : vector<16x384xf32>
    %33 = tpu.matmul %22, %17, %cst_29 {dimension_numbers = #tpu.dot_dimension_numbers<[1], [0], [0], [1], [0, 0, 1, 1], [], []>} : vector<16x128xf32>, vector<128x384xf32>, vector<16x384xf32> -> vector<16x384xf32>
    %34 = vector.extract_strided_slice %32 {offsets = [0, 0], sizes = [16, 256], strides = [1, 1]} : vector<16x384xf32> to vector<16x256xf32>
    %35 = vector.extract_strided_slice %33 {offsets = [0, 0], sizes = [16, 256], strides = [1, 1]} : vector<16x384xf32> to vector<16x256xf32>
    %36 = arith.addf %34, %35 : vector<16x256xf32>
    %37 = arith.negf %36 : vector<16x256xf32>
    %38 = math.exp %37 : vector<16x256xf32>
    %cst_30 = arith.constant 1.000000e+00 : f32
    %39 = vector.broadcast %cst_30 : f32 to vector<16x256xf32>
    %40 = arith.addf %39, %38 : vector<16x256xf32>
    %41 = arith.divf %39, %40 : vector<16x256xf32>
    %42 = vector.extract_strided_slice %41 {offsets = [0, 0], sizes = [16, 128], strides = [1, 1]} : vector<16x256xf32> to vector<16x128xf32>
    %43 = vector.extract_strided_slice %41 {offsets = [0, 128], sizes = [16, 128], strides = [1, 1]} : vector<16x256xf32> to vector<16x128xf32>
    %44 = vector.extract_strided_slice %32 {offsets = [0, 256], sizes = [16, 128], strides = [1, 1]} : vector<16x384xf32> to vector<16x128xf32>
    %45 = vector.extract_strided_slice %33 {offsets = [0, 256], sizes = [16, 128], strides = [1, 1]} : vector<16x384xf32> to vector<16x128xf32>
    %46 = vector.broadcast %18 : vector<1x128xf32> to vector<16x128xf32>
    %47 = arith.addf %45, %46 : vector<16x128xf32>
    %48 = arith.mulf %42, %47 : vector<16x128xf32>
    %49 = arith.addf %44, %48 : vector<16x128xf32>
    %50 = math.tanh %49 : vector<16x128xf32>
    %cst_31 = arith.constant 1.000000e+00 : f32
    %51 = vector.broadcast %cst_31 : f32 to vector<16x128xf32>
    %52 = arith.subf %51, %43 : vector<16x128xf32>
    %53 = arith.mulf %52, %50 : vector<16x128xf32>
    %54 = arith.mulf %43, %22 : vector<16x128xf32>
    %55 = arith.addf %53, %54 : vector<16x128xf32>
    %c1_i32 = arith.constant 1 : i32
    %c16_i32_32 = arith.constant 16 : i32
    %56 = arith.muli %c1_i32, %c16_i32_32 : i32
    %57 = tpu.assume_multiple %56, 8 : i32
    %c3_i32_33 = arith.constant 3 : i32
    %58 = arith.subi %c3_i32_33, %c1_i32 : i32
    %c16_i32_34 = arith.constant 16 : i32
    %59 = arith.muli %58, %c16_i32_34 : i32
    %60 = tpu.assume_multiple %59, 8 : i32
    %61 = arith.index_cast %57 : i32 to index
    %c0_35 = arith.constant 0 : index
    %62 = vector.load %arg16[%61, %c0_35] : memref<64x384xf32, #tpu.memory_space<vmem>>, vector<16x384xf32>
    %63 = arith.index_cast %60 : i32 to index
    %c0_36 = arith.constant 0 : index
    %64 = vector.load %arg17[%63, %c0_36] : memref<64x384xf32, #tpu.memory_space<vmem>>, vector<16x384xf32>
    %65 = arith.addf %62, %64 : vector<16x384xf32>
    %cst_37 = arith.constant dense<0.000000e+00> : vector<16x384xf32>
    %66 = tpu.matmul %55, %17, %cst_37 {dimension_numbers = #tpu.dot_dimension_numbers<[1], [0], [0], [1], [0, 0, 1, 1], [], []>} : vector<16x128xf32>, vector<128x384xf32>, vector<16x384xf32> -> vector<16x384xf32>
    %67 = vector.extract_strided_slice %65 {offsets = [0, 0], sizes = [16, 256], strides = [1, 1]} : vector<16x384xf32> to vector<16x256xf32>
    %68 = vector.extract_strided_slice %66 {offsets = [0, 0], sizes = [16, 256], strides = [1, 1]} : vector<16x384xf32> to vector<16x256xf32>
    %69 = arith.addf %67, %68 : vector<16x256xf32>
    %70 = arith.negf %69 : vector<16x256xf32>
    %71 = math.exp %70 : vector<16x256xf32>
    %cst_38 = arith.constant 1.000000e+00 : f32
    %72 = vector.broadcast %cst_38 : f32 to vector<16x256xf32>
    %73 = arith.addf %72, %71 : vector<16x256xf32>
    %74 = arith.divf %72, %73 : vector<16x256xf32>
    %75 = vector.extract_strided_slice %74 {offsets = [0, 0], sizes = [16, 128], strides = [1, 1]} : vector<16x256xf32> to vector<16x128xf32>
    %76 = vector.extract_strided_slice %74 {offsets = [0, 128], sizes = [16, 128], strides = [1, 1]} : vector<16x256xf32> to vector<16x128xf32>
    %77 = vector.extract_strided_slice %65 {offsets = [0, 256], sizes = [16, 128], strides = [1, 1]} : vector<16x384xf32> to vector<16x128xf32>
    %78 = vector.extract_strided_slice %66 {offsets = [0, 256], sizes = [16, 128], strides = [1, 1]} : vector<16x384xf32> to vector<16x128xf32>
    %79 = vector.broadcast %18 : vector<1x128xf32> to vector<16x128xf32>
    %80 = arith.addf %78, %79 : vector<16x128xf32>
    %81 = arith.mulf %75, %80 : vector<16x128xf32>
    %82 = arith.addf %77, %81 : vector<16x128xf32>
    %83 = math.tanh %82 : vector<16x128xf32>
    %cst_39 = arith.constant 1.000000e+00 : f32
    %84 = vector.broadcast %cst_39 : f32 to vector<16x128xf32>
    %85 = arith.subf %84, %76 : vector<16x128xf32>
    %86 = arith.mulf %85, %83 : vector<16x128xf32>
    %87 = arith.mulf %76, %55 : vector<16x128xf32>
    %88 = arith.addf %86, %87 : vector<16x128xf32>
    %c2_i32 = arith.constant 2 : i32
    %c16_i32_40 = arith.constant 16 : i32
    %89 = arith.muli %c2_i32, %c16_i32_40 : i32
    %90 = tpu.assume_multiple %89, 8 : i32
    %c3_i32_41 = arith.constant 3 : i32
    %91 = arith.subi %c3_i32_41, %c2_i32 : i32
    %c16_i32_42 = arith.constant 16 : i32
    %92 = arith.muli %91, %c16_i32_42 : i32
    %93 = tpu.assume_multiple %92, 8 : i32
    %94 = arith.index_cast %90 : i32 to index
    %c0_43 = arith.constant 0 : index
    %95 = vector.load %arg16[%94, %c0_43] : memref<64x384xf32, #tpu.memory_space<vmem>>, vector<16x384xf32>
    %96 = arith.index_cast %93 : i32 to index
    %c0_44 = arith.constant 0 : index
    %97 = vector.load %arg17[%96, %c0_44] : memref<64x384xf32, #tpu.memory_space<vmem>>, vector<16x384xf32>
    %98 = arith.addf %95, %97 : vector<16x384xf32>
    %cst_45 = arith.constant dense<0.000000e+00> : vector<16x384xf32>
    %99 = tpu.matmul %88, %17, %cst_45 {dimension_numbers = #tpu.dot_dimension_numbers<[1], [0], [0], [1], [0, 0, 1, 1], [], []>} : vector<16x128xf32>, vector<128x384xf32>, vector<16x384xf32> -> vector<16x384xf32>
    %100 = vector.extract_strided_slice %98 {offsets = [0, 0], sizes = [16, 256], strides = [1, 1]} : vector<16x384xf32> to vector<16x256xf32>
    %101 = vector.extract_strided_slice %99 {offsets = [0, 0], sizes = [16, 256], strides = [1, 1]} : vector<16x384xf32> to vector<16x256xf32>
    %102 = arith.addf %100, %101 : vector<16x256xf32>
    %103 = arith.negf %102 : vector<16x256xf32>
    %104 = math.exp %103 : vector<16x256xf32>
    %cst_46 = arith.constant 1.000000e+00 : f32
    %105 = vector.broadcast %cst_46 : f32 to vector<16x256xf32>
    %106 = arith.addf %105, %104 : vector<16x256xf32>
    %107 = arith.divf %105, %106 : vector<16x256xf32>
    %108 = vector.extract_strided_slice %107 {offsets = [0, 0], sizes = [16, 128], strides = [1, 1]} : vector<16x256xf32> to vector<16x128xf32>
    %109 = vector.extract_strided_slice %107 {offsets = [0, 128], sizes = [16, 128], strides = [1, 1]} : vector<16x256xf32> to vector<16x128xf32>
    %110 = vector.extract_strided_slice %98 {offsets = [0, 256], sizes = [16, 128], strides = [1, 1]} : vector<16x384xf32> to vector<16x128xf32>
    %111 = vector.extract_strided_slice %99 {offsets = [0, 256], sizes = [16, 128], strides = [1, 1]} : vector<16x384xf32> to vector<16x128xf32>
    %112 = vector.broadcast %18 : vector<1x128xf32> to vector<16x128xf32>
    %113 = arith.addf %111, %112 : vector<16x128xf32>
    %114 = arith.mulf %108, %113 : vector<16x128xf32>
    %115 = arith.addf %110, %114 : vector<16x128xf32>
    %116 = math.tanh %115 : vector<16x128xf32>
    %cst_47 = arith.constant 1.000000e+00 : f32
    %117 = vector.broadcast %cst_47 : f32 to vector<16x128xf32>
    %118 = arith.subf %117, %109 : vector<16x128xf32>
    %119 = arith.mulf %118, %116 : vector<16x128xf32>
    %120 = arith.mulf %109, %88 : vector<16x128xf32>
    %121 = arith.addf %119, %120 : vector<16x128xf32>
    %c3_i32_48 = arith.constant 3 : i32
    %c16_i32_49 = arith.constant 16 : i32
    %122 = arith.muli %c3_i32_48, %c16_i32_49 : i32
    %123 = tpu.assume_multiple %122, 8 : i32
    %c3_i32_50 = arith.constant 3 : i32
    %124 = arith.subi %c3_i32_50, %c3_i32_48 : i32
    %c16_i32_51 = arith.constant 16 : i32
    %125 = arith.muli %124, %c16_i32_51 : i32
    %126 = tpu.assume_multiple %125, 8 : i32
    %127 = arith.index_cast %123 : i32 to index
    %c0_52 = arith.constant 0 : index
    %128 = vector.load %arg16[%127, %c0_52] : memref<64x384xf32, #tpu.memory_space<vmem>>, vector<16x384xf32>
    %129 = arith.index_cast %126 : i32 to index
    %c0_53 = arith.constant 0 : index
    %130 = vector.load %arg17[%129, %c0_53] : memref<64x384xf32, #tpu.memory_space<vmem>>, vector<16x384xf32>
    %131 = arith.addf %128, %130 : vector<16x384xf32>
    %cst_54 = arith.constant dense<0.000000e+00> : vector<16x384xf32>
    %132 = tpu.matmul %121, %17, %cst_54 {dimension_numbers = #tpu.dot_dimension_numbers<[1], [0], [0], [1], [0, 0, 1, 1], [], []>} : vector<16x128xf32>, vector<128x384xf32>, vector<16x384xf32> -> vector<16x384xf32>
    %133 = vector.extract_strided_slice %131 {offsets = [0, 0], sizes = [16, 256], strides = [1, 1]} : vector<16x384xf32> to vector<16x256xf32>
    %134 = vector.extract_strided_slice %132 {offsets = [0, 0], sizes = [16, 256], strides = [1, 1]} : vector<16x384xf32> to vector<16x256xf32>
    %135 = arith.addf %133, %134 : vector<16x256xf32>
    %136 = arith.negf %135 : vector<16x256xf32>
    %137 = math.exp %136 : vector<16x256xf32>
    %cst_55 = arith.constant 1.000000e+00 : f32
    %138 = vector.broadcast %cst_55 : f32 to vector<16x256xf32>
    %139 = arith.addf %138, %137 : vector<16x256xf32>
    %140 = arith.divf %138, %139 : vector<16x256xf32>
    %141 = vector.extract_strided_slice %140 {offsets = [0, 0], sizes = [16, 128], strides = [1, 1]} : vector<16x256xf32> to vector<16x128xf32>
    %142 = vector.extract_strided_slice %140 {offsets = [0, 128], sizes = [16, 128], strides = [1, 1]} : vector<16x256xf32> to vector<16x128xf32>
    %143 = vector.extract_strided_slice %131 {offsets = [0, 256], sizes = [16, 128], strides = [1, 1]} : vector<16x384xf32> to vector<16x128xf32>
    %144 = vector.extract_strided_slice %132 {offsets = [0, 256], sizes = [16, 128], strides = [1, 1]} : vector<16x384xf32> to vector<16x128xf32>
    %145 = vector.broadcast %18 : vector<1x128xf32> to vector<16x128xf32>
    %146 = arith.addf %144, %145 : vector<16x128xf32>
    %147 = arith.mulf %141, %146 : vector<16x128xf32>
    %148 = arith.addf %143, %147 : vector<16x128xf32>
    %149 = math.tanh %148 : vector<16x128xf32>
    %cst_56 = arith.constant 1.000000e+00 : f32
    %150 = vector.broadcast %cst_56 : f32 to vector<16x128xf32>
    %151 = arith.subf %150, %142 : vector<16x128xf32>
    %152 = arith.mulf %151, %149 : vector<16x128xf32>
    %153 = arith.mulf %142, %121 : vector<16x128xf32>
    %154 = arith.addf %152, %153 : vector<16x128xf32>
    %c4_i32 = arith.constant 4 : i32
    %c0_57 = arith.constant 0 : index
    %c0_58 = arith.constant 0 : index
    %155 = vector.load %arg18[%c0_57, %c0_58] : memref<16x128xf32, #tpu.memory_space<vmem>>, vector<16x128xf32>
    tpu.vector_store %arg18[%c0_57, %c0_58], %154 {strides = array<i32>} : memref<16x128xf32, #tpu.memory_space<vmem>>, vector<16x128xf32>,
    %c1_i32_59 = arith.constant 1 : i32
    %156 = arith.cmpi eq, %arg1, %c1_i32_59 : i32
    %157 = arith.extui %156 : i1 to i32
    %c0_i32_60 = arith.constant 0 : i32
    %158 = arith.cmpi ne, %157, %c0_i32_60 : i32
    scf.if %158 {
      %c0_61 = arith.constant 0 : index
      %c0_62 = arith.constant 0 : index
      %159 = vector.load %arg19[%c0_61, %c0_62] : memref<16x128xf32, #tpu.memory_space<vmem>>, vector<16x128xf32>
      %c0_63 = arith.constant 0 : index
      %c0_64 = arith.constant 0 : index
      %160 = vector.load %arg10[%c0_63, %c0_64] : memref<128x32xf32, #tpu.memory_space<vmem>>, vector<128x32xf32>
      %cst_65 = arith.constant dense<0.000000e+00> : vector<16x32xf32>
      %161 = tpu.matmul %159, %160, %cst_65 {dimension_numbers = #tpu.dot_dimension_numbers<[1], [0], [0], [1], [0, 0, 1, 1], [], []>} : vector<16x128xf32>, vector<128x32xf32>, vector<16x32xf32> -> vector<16x32xf32>
      %c0_66 = arith.constant 0 : index
      %c0_67 = arith.constant 0 : index
      %162 = vector.load %arg11[%c0_66, %c0_67] : memref<128x32xf32, #tpu.memory_space<vmem>>, vector<128x32xf32>
      %cst_68 = arith.constant dense<0.000000e+00> : vector<16x32xf32>
      %163 = tpu.matmul %154, %162, %cst_68 {dimension_numbers = #tpu.dot_dimension_numbers<[1], [0], [0], [1], [0, 0, 1, 1], [], []>} : vector<16x128xf32>, vector<128x32xf32>, vector<16x32xf32> -> vector<16x32xf32>
      %164 = arith.addf %161, %163 : vector<16x32xf32>
      %c0_69 = arith.constant 0 : index
      %c0_70 = arith.constant 0 : index
      %165 = vector.load %arg12[%c0_69, %c0_70] : memref<1x32xf32, #tpu.memory_space<vmem>>, vector<1x32xf32>
      %166 = vector.broadcast %165 : vector<1x32xf32> to vector<16x32xf32>
      %167 = arith.addf %164, %166 : vector<16x32xf32>
      %cst_71 = arith.constant 0.000000e+00 : f32
      %168 = vector.broadcast %cst_71 : f32 to vector<16x32xf32>
      %169 = arith.cmpf oge, %167, %168 : vector<16x32xf32>
      %cst_72 = arith.constant 0.00999999977 : f32
      %170 = vector.broadcast %cst_72 : f32 to vector<16x32xf32>
      %171 = arith.mulf %170, %167 : vector<16x32xf32>
      %172 = arith.select %169, %167, %171 : vector<16x32xi1>, vector<16x32xf32>
      %c0_73 = arith.constant 0 : index
      %c0_74 = arith.constant 0 : index
      %173 = vector.load %arg13[%c0_73, %c0_74] : memref<1x32xf32, #tpu.memory_space<vmem>>, vector<1x32xf32>
      %174 = vector.broadcast %173 : vector<1x32xf32> to vector<16x32xf32>
      %175 = arith.mulf %172, %174 : vector<16x32xf32>
      %cst_75 = arith.constant dense<0.000000e+00> : vector<16xf32>
      %176 = vector.multi_reduction <add>, %175, %cst_75 [1] : vector<16x32xf32> to vector<16xf32>
      %177 = vector.shape_cast %176 : vector<16xf32> to vector<16x1xf32>
      %c0_76 = arith.constant 0 : index
      %c0_77 = arith.constant 0 : index
      %178 = vector.load %arg14[%c0_76, %c0_77] : memref<1x1xf32, #tpu.memory_space<vmem>>, vector<1x1xf32>
      %179 = vector.broadcast %178 : vector<1x1xf32> to vector<16x1xf32>
      %180 = arith.addf %177, %179 : vector<16x1xf32>
      %c0_78 = arith.constant 0 : index
      %c0_79 = arith.constant 0 : index
      %181 = vector.load %arg15[%c0_78, %c0_79] : memref<16x1xf32, #tpu.memory_space<vmem>>, vector<16x1xf32>
      tpu.vector_store %arg15[%c0_78, %c0_79], %180 {strides = array<i32>} : memref<16x1xf32, #tpu.memory_space<vmem>>, vector<16x1xf32>,
    } else {
    }
    return
  }
  func.func @transform_0(%arg0: i32, %arg1: i32) -> (i32, i32) {
    %c2_i32 = arith.constant 2 : i32
    %0 = arith.muli %arg0, %c2_i32 : i32
    %1 = arith.addi %0, %arg1 : i32
    %c0_i32 = arith.constant 0 : i32
    %c0_i32_0 = arith.constant 0 : i32
    return %1, %c0_i32 : i32, i32
  }
  func.func @transform_1(%arg0: i32, %arg1: i32) -> (i32, i32) {
    %c2_i32 = arith.constant 2 : i32
    %0 = arith.muli %arg0, %c2_i32 : i32
    %c1_i32 = arith.constant 1 : i32
    %1 = arith.subi %c1_i32, %arg1 : i32
    %2 = arith.addi %0, %1 : i32
    %c0_i32 = arith.constant 0 : i32
    %c0_i32_0 = arith.constant 0 : i32
    return %2, %c0_i32 : i32, i32
  }
  func.func @transform_2(%arg0: i32, %arg1: i32) -> (i32, i32) {
    %c0_i32 = arith.constant 0 : i32
    %c0_i32_0 = arith.constant 0 : i32
    %c0_i32_1 = arith.constant 0 : i32
    return %c0_i32, %c0_i32_0 : i32, i32
  }
  func.func @transform_3(%arg0: i32, %arg1: i32) -> (i32, i32) {
    %c0_i32 = arith.constant 0 : i32
    %c0_i32_0 = arith.constant 0 : i32
    %c0_i32_1 = arith.constant 0 : i32
    return %c0_i32, %c0_i32_0 : i32, i32
  }
  func.func @transform_4(%arg0: i32, %arg1: i32) -> (i32, i32) {
    %c0_i32 = arith.constant 0 : i32
    %c0_i32_0 = arith.constant 0 : i32
    %c0_i32_1 = arith.constant 0 : i32
    return %c0_i32, %c0_i32_0 : i32, i32
  }
  func.func @transform_5(%arg0: i32, %arg1: i32) -> (i32, i32) {
    %c0_i32 = arith.constant 0 : i32
    %c0_i32_0 = arith.constant 0 : i32
    %c0_i32_1 = arith.constant 0 : i32
    return %c0_i32, %c0_i32_0 : i32, i32
  }
  func.func @transform_6(%arg0: i32, %arg1: i32) -> (i32, i32) {
    %c0_i32 = arith.constant 0 : i32
    %c0_i32_0 = arith.constant 0 : i32
    %c0_i32_1 = arith.constant 0 : i32
    return %c0_i32, %c0_i32_0 : i32, i32
  }
  func.func @transform_7(%arg0: i32, %arg1: i32) -> (i32, i32) {
    %c0_i32 = arith.constant 0 : i32
    %c0_i32_0 = arith.constant 0 : i32
    %c0_i32_1 = arith.constant 0 : i32
    return %c0_i32, %c0_i32_0 : i32, i32
  }
  func.func @transform_8(%arg0: i32, %arg1: i32) -> (i32, i32) {
    %c0_i32 = arith.constant 0 : i32
    %c0_i32_0 = arith.constant 0 : i32
    %c0_i32_1 = arith.constant 0 : i32
    return %c0_i32, %c0_i32_0 : i32, i32
  }
  func.func @transform_9(%arg0: i32, %arg1: i32) -> (i32, i32) {
    %c0_i32 = arith.constant 0 : i32
    %c0_i32_0 = arith.constant 0 : i32
    %c0_i32_1 = arith.constant 0 : i32
    return %c0_i32, %c0_i32_0 : i32, i32
  }
  func.func @transform_10(%arg0: i32, %arg1: i32) -> (i32, i32) {
    %c0_i32 = arith.constant 0 : i32
    %c0_i32_0 = arith.constant 0 : i32
    %c0_i32_1 = arith.constant 0 : i32
    return %c0_i32, %c0_i32_0 : i32, i32
  }
  func.func @transform_11(%arg0: i32, %arg1: i32) -> (i32, i32) {
    %c0_i32 = arith.constant 0 : i32
    %c0_i32_0 = arith.constant 0 : i32
    %c0_i32_1 = arith.constant 0 : i32
    return %c0_i32, %c0_i32_0 : i32, i32
  }
  func.func @transform_12(%arg0: i32, %arg1: i32) -> (i32, i32) {
    %c0_i32 = arith.constant 0 : i32
    %c0_i32_0 = arith.constant 0 : i32
    %c0_i32_1 = arith.constant 0 : i32
    return %c0_i32, %c0_i32_0 : i32, i32
  }
  func.func @transform_13(%arg0: i32, %arg1: i32) -> (i32, i32) {
    %c0_i32 = arith.constant 0 : i32
    %c0_i32_0 = arith.constant 0 : i32
    return %arg0, %c0_i32 : i32, i32
  }
}

</mosaic_0001>

<bundles_post_ra>
// kernel: tpu_custom_call.1
= control target key start
LH: loop header
LB: loop body
LE: loop exit
PB: predicated region body
PF: predicated region fallthrough
CT: control target
= control target key end

     0   :  { %s6086_s0 = inlined_call_operand.vmem [shape: bf16[128,300], index: 0, kind: input, shape index: {}]   ;;  %s6087_s1 = inlined_call_operand.vmem [shape: bf16[128,300], index: 1, kind: input, shape index: {}]   ;;  %s6088_s2 = inlined_call_operand.vmem [shape: bf16[300,384], index: 2, kind: input, shape index: {}]   ;;  %s6089_s3 = inlined_call_operand.vmem [shape: bf16[300,384], index: 3, kind: input, shape index: {}]   ;;  %s6090_s4 = inlined_call_operand.vmem [shape: f32[1,384], index: 4, kind: input, shape index: {}]   ;;  %s6091_s5 = inlined_call_operand.vmem [shape: f32[1,384], index: 5, kind: input, shape index: {}]   ;;  %s6092_s6 = inlined_call_operand.hbm [shape: f32[128,384], index: 6, kind: input, shape index: {}]   ;;  %s6093_s7 = inlined_call_operand.vmem [shape: f32[1,128], index: 7, kind: input, shape index: {}]   ;;  %s6094_s8 = inlined_call_operand.vmem [shape: f32[128,32], index: 8, kind: input, shape index: {}]   ;;  %s6095_s9 = inlined_call_operand.vmem [shape: f32[128,32], index: 9, kind: input, shape index: {}]   ;;  %s6096_s10 = inlined_call_operand.vmem [shape: f32[1,32], index: 10, kind: input, shape index: {}]   ;;  %s6097_s11 = inlined_call_operand.vmem [shape: f32[1,32], index: 11, kind: input, shape index: {}]   ;;  %s6098_s12 = inlined_call_operand.<no memory space> [shape: f32[1,1], index: 12, kind: input, shape index: {}]   ;;  %s6099_s13 = inlined_call_operand.vmem [shape: f32[16,1], index: 13, kind: output, shape index: {}]  }
   0x1   :  { %v18_v0 = vstv %s6098_s12 }
   0x2   :  { %19 = vst [vmem:[#allocation6] sm:$0x1] %v18_v0 }
   0x3   :  { %20 = vsyncpa [#allocation8], 0  ;;  %s4993_s27 = smov 0   ;;  %s4995_s28 = smov 0  }
   0x4   :  { %s4997_s29 = smov 0  }
   0x5 LB: > { %s3448_s12 = sadd.s32 4294967295, %s4912_s29   ;;  %s35_s30 = sadd.s32 1, %s4908_s28  ;;  %s4912_s29 = sphi %s4997_s29, %s26_s29   ;;  %s4908_s28 = sphi %s4995_s28, %s6149_s28   ;;  %s4904_s27 = sphi %s4993_s27, %s6148_s27  }
   0x6   : > { %p36_p0 = scmp.ge.s32.totalorder %s35_s30, 2  ;;  %p3449_p1 = scmp.ge.s32.totalorder %s4912_s29, 1 }
   0x7   : > { %p362_p2 = scmp.lt.s32.totalorder %s4912_s29, 3  ;;  %p5018_p4 = scmp.eq.s32.totalorder %s3448_s12, 0 }
   0x8   : > { %s6151_s30 = smov (%p36_p0, %s35_s30), 0  ;;  %s4914_s16 = smov [#allocation7]  }
   0x9   : > { %p5014_p3 = pnand %p3449_p1, %p362_p2  ;;  %s386_s17 = sshll.u32 %s4914_s16, 4  ;;  %s387_s17 = int_to_ptr.vmem [resolvable:$true] %s386_s17 }
   0xa   : > { %s6104_s15 = scalar_select %p5018_p4, 1, 0 }
   0xb   : > { %s6103_s14 = scalar_select %p5014_p3, 1, 0 }
   0xc   : > { %p4538_p5 = pneg %p5014_p3  ;;  %s4858_s21 = scalar_lea.hbm %s6092_s6, 6144 }
   0xd   : > { %p4859_p7 = scmp.ne.s32.totalorder %s6092_s6, %s4858_s21  ;;  %p4865_p11 = scmp.lt.u32.totalorder %s4858_s21, %s6092_s6 }
   0xe   : > { %p5026_p6 = pnand %p5018_p4, %p4538_p5 }
  0x10   : > { %p4860_p8 = pneg %p5026_p6 }
  0x12   : > { %p4861_p9 = pnand %p4860_p8, %p4859_p7 }
  0x14   : > { %p4862_p10 = pneg %p4861_p9 }
  0x16   : > { %p4867_p12 = pnand %p4865_p11, %p4862_p10 }
  0x18   : > { %4870 = shalt.err (!%p4867_p12)
}
  0x19   : > { %s4871_s26 = scalar_lea.vmem %s387_s17, 6144  ;;  %p4879_p2 = scmp.lt.s32.totalorder %s387_s17, %s387_s17 }
  0x1a   : > { %p4872_p13 = scmp.ne.s32.totalorder %s387_s17, %s4871_s26  ;;  %p4880_p5 = scmp.lt.s32.totalorder %s4871_s26, %s4871_s26 }
  0x1c   : > { %p4874_p0 = pnand %p4872_p13, %p4860_p8  ;;  %p4881_p4 = por %p4880_p5, %p4879_p2 }
  0x1e   : > { %p4875_p1 = pneg %p4874_p0 }
  0x20   : > { %p4882_p3 = pnand %p4881_p4, %p4875_p1 }
  0x22   : > { %4885 = shalt.err (!%p4882_p3)
}
  0x23   : > { %s4915_s12 = smov 384   ;;  %s4916_s16 = smov 24  }
  0x24   : > { %4541 = dma.hbm_to_vmem [thread:$0]  (!%p5026_p6), %s6092_s6, 6144, %s387_s17, [#allocation8], %s4915_s12, %s4915_s12, %s4916_s16  }
  0x25   : > { %p6106_p7 = scmp.ne.s32.totalorder %s6103_s14, 0 }
  0x27   : > { %450 = sbr.rel (%p6106_p7) target bundleno = 2015 (0x7df), region = 72 }
  0x2e   : > { %p6107_p9 = scmp.ne.s32.totalorder %s6104_s15, 0 }
  0x30   : > { %4899 = dma.done.wait (%p6107_p9), [#allocation8], 6144  }
  0x31   : > { %4901 = vsyncadd (%p6107_p9), [#allocation8], 4294961152  ;;  %s3454_s21 = sshll.u32 %s4904_s27, 3  ;;  %s518_s22 = ssub.s32 1, %s4904_s27 }
  0x32   : > { %p509_p3 = scmp.lt.s32.totalorder %s3454_s21, 15  ;;  %s3456_s23 = sshll.u32 %s518_s22, 3 }
  0x33   : > { %p521_p4 = scmp.lt.s32.totalorder %s3456_s23, 15  ;;  %p3458_p6 = scmp.ne.s32.totalorder %s4904_s27, 0 }
  0x34   : > { %s6153_s21 = smov (!%p509_p3, %s3454_s21), 15  ;;  %v4917_v1 = vmov (!%p3458_p6), 0.0  }
  0x35   : > { %s6155_s23 = smov (!%p521_p4, %s3456_s23), 15  ;;  %s4532_s18 = smul.u32 12, %s6153_s21  ;;  %541 = vst [vmem:[#allocation4] sm:$0xff] (!%p3458_p6), %v4917_v1  ;;  %542 = vst [vmem:[#allocation4 + $0x8] sm:$0xff] (!%p3458_p6), %v4917_v1 }
  0x36   : > { %s4533_s17 = smul.u32 12, %s6155_s23 }
  0x37   : > { %s5057_s25 = scalar_lea.vmem %s6086_s0, %s4532_s18  ;;  %540 = sbr.rel (%p3458_p6) target bundleno = 62 (0x3e), region = 80 }
  0x38   : > { %s5062_s15 = scalar_lea.vmem %s6087_s1, %s4533_s17 }
  0x3e PF: > { %v4574_v2 = vld [vmem:[%s6088_s2 + $0x4] ss:$12 sps:$4 sm:$0xff]   ;;  %v4576_v3 = vld [vmem:[%s6088_s2] ss:$12 sps:$4 sm:$0xff]   ;;  %v4577_v4 = vld [vmem:[%s6088_s2 + $0x1c] ss:$12 sps:$4 sm:$0xff]  }
  0x3f   : > { %1036 = vmatprep.subr.bf16.mxu0 %v4574_v2  ;;  %v4579_v5 = vld [vmem:[%s6088_s2 + $0x18] ss:$12 sps:$4 sm:$0xff]   ;;  %v4580_v6 = vld [vmem:[%s6088_s2 + $0x34] ss:$12 sps:$4 sm:$0xff]   ;;  %v4582_v7 = vld [vmem:[%s6088_s2 + $0x30] ss:$12 sps:$4 sm:$0xff]  }
  0x40   : > { %1037 = vmatpush1.bf16.msra.mxu0 %v4576_v3  ;;  %v4583_v8 = vld [vmem:[%s6088_s2 + $0x4c] ss:$12 sps:$4 sm:$0xff]   ;;  %v4585_v9 = vld [vmem:[%s6088_s2 + $0x48] ss:$12 sps:$4 sm:$0xff]   ;;  %v4586_v10 = vld [vmem:[%s6088_s2 + $0x64] ss:$12 sps:$4 sm:$0xff]  }
  0x41   : > { %1038 = vmatprep.subr.bf16.mxu0 %v4577_v4  ;;  %v4588_v11 = vld [vmem:[%s6088_s2 + $0x60] ss:$12 sps:$4 sm:$0xff]   ;;  %v4589_v12 = vld [vmem:[%s6088_s2 + $0x7c] ss:$12 sps:$4 sm:$0xff]   ;;  %v4591_v13 = vld [vmem:[%s6088_s2 + $0x78] ss:$12 sps:$4 sm:$0xff]  }
  0x42   : > { %v4613_v14 = vld [vmem:[%s6088_s2 + $0xc8] ss:$12 sps:$4 sm:$0xff]   ;;  %v4618_v17 = vld [vmem:[%s6088_s2 + $0xe0] ss:$12 sps:$4 sm:$0xff]   ;;  %v4594_v19 = vld [vmem:[%s6088_s2 + $0x90] ss:$12 sps:$4 sm:$0xff]  }
  0x43   : > { %v4614_v15 = vld [vmem:[%s6088_s2 + $0x8] ss:$12 sps:$4 sm:$0xff]   ;;  %3644 = vmatprep.subr.bf16.mxu1 %v4613_v14  ;;  %v4619_v18 = vld [vmem:[%s6088_s2 + $0x20] ss:$12 sps:$4 sm:$0xff]   ;;  %v4623_v21 = vld [vmem:[%s6088_s2 + $0xf8] ss:$12 sps:$4 sm:$0xff]  }
  0x44   : > { %1039 = vmatpush1.bf16.msra.mxu0 %v4579_v5  ;;  %v4592_v16 = vld [vmem:[%s6088_s2 + $0x94] ss:$12 sps:$4 sm:$0xff]   ;;  %3645 = vmatpush3.bf16.msra.mxu1 %v4614_v15  ;;  %v4595_v20 = vld [vmem:[%s6088_s2 + $0xac] ss:$12 sps:$4 sm:$0xff]   ;;  %v4598_v24 = vld [vmem:[%s6088_s2 + $0xc4] ss:$12 sps:$4 sm:$0xff]  }
  0x45   : > { %1040 = vmatprep.subr.bf16.mxu0 %v4580_v6  ;;  %3646 = vmatprep.subr.bf16.mxu1 %v4618_v17  ;;  %v4624_v22 = vld [vmem:[%s6088_s2 + $0x38] ss:$12 sps:$4 sm:$0xff]   ;;  %v4597_v23 = vld [vmem:[%s6088_s2 + $0xa8] ss:$12 sps:$4 sm:$0xff]   ;;  %v4628_v25 = vld [vmem:[%s6088_s2 + $0x110] ss:$12 sps:$4 sm:$0xff]  }
  0x46   : > { %v4629_v26 = vld [vmem:[%s6088_s2 + $0x50] ss:$12 sps:$4 sm:$0xff]   ;;  %v4600_v28 = vld [vmem:[%s6088_s2 + $0xc0] ss:$12 sps:$4 sm:$0xff]   ;;  %v4636_v30 = vld [vmem:[%s6088_s2 + $0x128] ss:$12 sps:$4 sm:$0xff]  }
  0x47   : > { %v4632_v27 = vld [vmem:[%s5057_s25 + $0x4] ss:$12 sps:$4 sm:$0xff]   ;;  %v4601_v29 = vld [vmem:[%s6088_s2 + $0xdc] ss:$12 sps:$4 sm:$0xff]   ;;  %v4638_v32 = vld [vmem:[%s6088_s2 + $0x140] ss:$12 sps:$4 sm:$0xff]  }
  0x48   : > { %1041 = vmatpush1.bf16.msra.mxu0 %v4582_v7  ;;  %3647 = vmatpush3.bf16.msra.mxu1 %v4619_v18  ;;  %v4637_v31 = vld [vmem:[%s6088_s2 + $0x68] ss:$12 sps:$4 sm:$0xff]   ;;  %v4603_v33 = vld [vmem:[%s6088_s2 + $0xd8] ss:$12 sps:$4 sm:$0xff]   ;;  %v4639_v35 = vld [vmem:[%s6088_s2 + $0x80] ss:$12 sps:$4 sm:$0xff]  }
  0x49   : > { %1042 = vmatprep.subr.bf16.mxu0 %v4583_v8  ;;  %3648 = vmatprep.subr.bf16.mxu1 %v4623_v21  ;;  %v4604_v34 = vld [vmem:[%s6088_s2 + $0xf4] ss:$12 sps:$4 sm:$0xff]   ;;  %v4643_v36 = vld [vmem:[%s6088_s2 + $0x158] ss:$12 sps:$4 sm:$0xff]   ;;  %v4606_v37 = vld [vmem:[%s6088_s2 + $0xf0] ss:$12 sps:$4 sm:$0xff]  }
  0x4a   : > { %1068 = vmatprep.mubr.bf16.mxu0 %v4632_v27  ;;  %1214 = vmatprep.mubr.bf16.mxu1 %v4632_v27  ;;  %v4607_v38 = vld [vmem:[%s6088_s2 + $0x10c] ss:$12 sps:$4 sm:$0xff]   ;;  %v4648_v40 = vld [vmem:[%s6088_s2 + $0x170] ss:$12 sps:$4 sm:$0xff]   ;;  %v4609_v41 = vld [vmem:[%s6088_s2 + $0x108] ss:$12 sps:$4 sm:$0xff]  }
  0x4b   : > { %v4644_v39 = vld [vmem:[%s6088_s2 + $0x98] ss:$12 sps:$4 sm:$0xff]   ;;  %v4649_v43 = vld [vmem:[%s6088_s2 + $0xb0] ss:$12 sps:$4 sm:$0xff]   ;;  %v4612_v44 = vld [vmem:[%s6088_s2 + $0x120] ss:$12 sps:$4 sm:$0xff]  }
  0x4c   : > { %1043 = vmatpush1.bf16.msra.mxu0 %v4585_v9  ;;  %3649 = vmatpush3.bf16.msra.mxu1 %v4624_v22  ;;  %v4610_v42 = vld [vmem:[%s6088_s2 + $0x124] ss:$12 sps:$4 sm:$0xff]   ;;  %v4615_v45 = vld [vmem:[%s6088_s2 + $0x13c] ss:$12 sps:$4 sm:$0xff]   ;;  %v4630_v47 = vld [vmem:[%s5057_s25] ss:$12 sps:$4 sm:$0xff]  }
  0x4d   : > { %1044 = vmatprep.subr.bf16.mxu0 %v4586_v10  ;;  %3650 = vmatprep.subr.bf16.mxu1 %v4628_v25  ;;  %v4617_v46 = vld [vmem:[%s6088_s2 + $0x138] ss:$12 sps:$4 sm:$0xff]   ;;  %v4640_v48 = vld [vmem:[%s5057_s25 + $0x1c] ss:$12 sps:$4 sm:$0xff]   ;;  %v4620_v50 = vld [vmem:[%s6088_s2 + $0x154] ss:$12 sps:$4 sm:$0xff]  }
  0x4e   : > { %v4666_v49 = vld [vmem:[%s6088_s2 + $0x188] ss:$12 sps:$4 sm:$0xff]   ;;  %v4670_v51 = vld [vmem:[%s6088_s2 + $0x1a0] ss:$12 sps:$4 sm:$0xff]   ;;  %v4622_v52 = vld [vmem:[%s6088_s2 + $0x150] ss:$12 sps:$4 sm:$0xff]  }
  0x4f   : > { %vm1026_vm0 = vcmask 1045504   ;;  %v4625_v53 = vld [vmem:[%s6088_s2 + $0x16c] ss:$12 sps:$4 sm:$0xff]   ;;  %v4627_v55 = vld [vmem:[%s6088_s2 + $0x168] ss:$12 sps:$4 sm:$0xff]   ;;  %vm1013_vm1 = vcmask 359424  }
  0x50   : > { %1045 = vmatpush1.bf16.msra.mxu0 %v4588_v11  ;;  %3651 = vmatpush3.bf16.msra.mxu1 %v4629_v26  ;;  %v4674_v54 = vld [vmem:[%s6088_s2 + $0x1b8] ss:$12 sps:$4 sm:$0x3f]   ;;  %v4650_v57 = vld [vmem:[%s5057_s25 + $0x34] ss:$12 sps:$4 sm:$0xff]   ;;  %v4918_v18 = vmov 0  }
  0x51   : > { %1046 = vmatprep.subr.bf16.mxu0 %v4589_v12  ;;  %3652 = vmatprep.subr.bf16.mxu1 %v4636_v30  ;;  %v4642_v56 = vld [vmem:[%s5057_s25 + $0x18] ss:$12 sps:$4 sm:$0xff]   ;;  %v1034_v58 = vsel %vm1026_vm0, %v4674_v54, 0  ;;  %v4679_v59 = vld [vmem:[%s6089_s3 + $0xc8] ss:$12 sps:$4 sm:$0xff]  }
  0x52   : > { %v4635_v60 = vld [vmem:[%s6088_s2 + $0x184] ss:$12 sps:$4 sm:$0xff]   ;;  %v4633_v61 = vld [vmem:[%s6088_s2 + $0x180] ss:$12 sps:$4 sm:$0xff]   ;;  %v4647_v62 = vld [vmem:[%s6088_s2 + $0x19c] ss:$12 sps:$4 sm:$0xff]  }
  0x53   : > { %v4645_v63 = vld [vmem:[%s6088_s2 + $0x198] ss:$12 sps:$4 sm:$0xff]   ;;  %v4652_v0 = vld [vmem:[%s5057_s25 + $0x30] ss:$12 sps:$4 sm:$0xff]   ;;  %v4658_v6 = vld [vmem:[%s5057_s25 + $0x48] ss:$12 sps:$4 sm:$0xff]  }
  0x54   : > { %1047 = vmatpush1.bf16.msra.mxu0 %v4591_v13  ;;  %3653 = vmatpush3.bf16.msra.mxu1 %v4637_v31  ;;  %v4653_v1 = vld [vmem:[%s6088_s2 + $0x1b4] ss:$12 sps:$4 sm:$0x3f]   ;;  %v4655_v2 = vld [vmem:[%s5057_s25 + $0x4c] ss:$12 sps:$4 sm:$0xff]  }
  0x55   : > { %1048 = vmatprep.subr.bf16.mxu0 %v4592_v16  ;;  %3654 = vmatprep.subr.bf16.mxu1 %v4638_v32  ;;  %v4657_v3 = vld [vmem:[%s6088_s2 + $0x1b0] ss:$12 sps:$4 sm:$0x3f]   ;;  %v4662_v7 = vld [vmem:[%s5057_s25 + $0x8] ss:$12 sps:$4 sm:$0xff]  }
  0x56   : > { %v4661_v4 = vld [vmem:[%s6089_s3 + $0x4] ss:$12 sps:$4 sm:$0xff]   ;;  %v1028_v5 = vsel %vm1026_vm0, %v4657_v3, 0  ;;  %v4678_v8 = vld [vmem:[%s5057_s25 + $0x20] ss:$12 sps:$4 sm:$0xff]  }
  0x57   : > { %v4680_v9 = vld [vmem:[%s6089_s3 + $0x8] ss:$12 sps:$4 sm:$0xff]   ;;  %v5263_v10 = vld [vmem:[%s5057_s25 + $0x38] ss:$12 sps:$4 sm:$0xff]   ;;  %v4684_v11 = vld [vmem:[%s6089_s3 + $0xe0] ss:$12 sps:$4 sm:$0xff]  }
  0x58   : > { %1049 = vmatpush1.bf16.msra.mxu0 %v4594_v19  ;;  %3655 = vmatpush3.bf16.msra.mxu1 %v4639_v35  ;;  %v4685_v12 = vld [vmem:[%s6089_s3 + $0x20] ss:$12 sps:$4 sm:$0xff]   ;;  %v4689_v13 = vld [vmem:[%s6089_s3 + $0xf8] ss:$12 sps:$4 sm:$0xff]   ;;  %v5278_v14 = vld [vmem:[%s5057_s25 + $0x50] ss:$12 sps:$4 sm:$0xff]  }
  0x59   : > { %1050 = vmatprep.subr.bf16.mxu0 %v4595_v20  ;;  %3656 = vmatprep.subr.bf16.mxu1 %v4643_v36  ;;  %v4690_v15 = vld [vmem:[%s6089_s3 + $0x38] ss:$12 sps:$4 sm:$0xff]   ;;  %v4694_v17 = vld [vmem:[%s6089_s3 + $0x110] ss:$12 sps:$4 sm:$0xff]   ;;  %v4701_v20 = vld [vmem:[%s6089_s3 + $0x128] ss:$12 sps:$4 sm:$0xff]  }
  0x5a   : > { %v5284_v16 = vld [vmem:[%s5062_s15 + $0x4] ss:$12 sps:$4 sm:$0xff]   ;;  %v4659_v21 = vld [vmem:[%s6089_s3] ss:$12 sps:$4 sm:$0xff]   ;;  %v4665_v22 = vld [vmem:[%s6089_s3 + $0x1c] ss:$12 sps:$4 sm:$0xff]  }
  0x5b   : > { %v4695_v19 = vld [vmem:[%s6089_s3 + $0x50] ss:$12 sps:$4 sm:$0xff]   ;;  %v4663_v25 = vld [vmem:[%s6089_s3 + $0x18] ss:$12 sps:$4 sm:$0xff]   ;;  %v4669_v26 = vld [vmem:[%s6089_s3 + $0x34] ss:$12 sps:$4 sm:$0xff]  }
  0x5c   : > { %1051 = vmatpush1.bf16.msra.mxu0 %v4597_v23  ;;  %3657 = vmatpush3.bf16.msra.mxu1 %v4644_v39  ;;  %v4702_v23 = vld [vmem:[%s6089_s3 + $0x68] ss:$12 sps:$4 sm:$0xff]   ;;  %v4707_v27 = vld [vmem:[%s6089_s3 + $0x80] ss:$12 sps:$4 sm:$0xff]   ;;  %v4712_v31 = vld [vmem:[%s6089_s3 + $0x98] ss:$12 sps:$4 sm:$0xff]  }
  0x5d   : > { %1052 = vmatprep.subr.bf16.mxu0 %v4598_v24  ;;  %3658 = vmatprep.subr.bf16.mxu1 %v4648_v40  ;;  %v4706_v24 = vld [vmem:[%s6089_s3 + $0x140] ss:$12 sps:$4 sm:$0xff]   ;;  %v4716_v32 = vld [vmem:[%s6089_s3 + $0x170] ss:$12 sps:$4 sm:$0xff]   ;;  %v4742_v36 = vld [vmem:[%s6089_s3 + $0x188] ss:$12 sps:$4 sm:$0xff]  }
  0x5e   : > { %v4673_v30 = vld [vmem:[%s6089_s3 + $0x4c] ss:$12 sps:$4 sm:$0xff]   ;;  %v4717_v35 = vld [vmem:[%s6089_s3 + $0xb0] ss:$12 sps:$4 sm:$0xff]  }
  0x5f   : > { %v5358_v39 = vld [vmem:[%s5062_s15] ss:$12 sps:$4 sm:$0xff]   ;;  %v5361_v40 = vld [vmem:[%s5062_s15 + $0x1c] ss:$12 sps:$4 sm:$0xff]   ;;  %v4756_v3 = vld [vmem:[%s5062_s15 + $0x38] ss:$12 sps:$4 sm:$0xff]  }
  0x60   : > { %1053 = vmatpush1.bf16.msra.mxu0 %v4600_v28  ;;  %3659 = vmatpush3.bf16.msra.mxu1 %v4649_v43  ;;  %v4711_v28 = vld [vmem:[%s6089_s3 + $0x158] ss:$12 sps:$4 sm:$0xff]   ;;  %v4688_v43 = vld [vmem:[%s6089_s3 + $0x94] ss:$12 sps:$4 sm:$0xff]  }
  0x61   : > { %1054 = vmatprep.subr.bf16.mxu0 %v4601_v29  ;;  %3846 = vmatprep.subr.bf16.mxu1 %v4666_v49  ;;  %v4667_v29 = vld [vmem:[%s6089_s3 + $0x30] ss:$12 sps:$4 sm:$0xff]  }
  0x63   : > { %1215 = vmatmul.mubr.bf16.vlgmr.msra.gmra.mrb[0].mxu1 %v4630_v47 }
  0x64   : > { %1055 = vmatpush1.bf16.msra.mxu0 %v4603_v33  ;;  %1222 = vmatprep.mubr.bf16.mxu1 %v4640_v48  ;;  %v4671_v33 = vld [vmem:[%s6089_s3 + $0x48] ss:$12 sps:$4 sm:$0xff]  }
  0x65   : > { %1056 = vmatprep.subr.bf16.mxu0 %v4604_v34  ;;  %3847 = vmatpush3.bf16.msra.mxu1 %v4666_v49  ;;  %v4677_v34 = vld [vmem:[%s6089_s3 + $0x64] ss:$12 sps:$4 sm:$0xff]  }
  0x66   : > { %3848 = vmatprep.subr.bf16.mxu1 %v4670_v51 }
  0x68   : > { %1057 = vmatpush1.bf16.msra.mxu0 %v4606_v37  ;;  %v4675_v37 = vld [vmem:[%s6089_s3 + $0x60] ss:$12 sps:$4 sm:$0xff]  }
  0x69   : > { %1058 = vmatprep.subr.bf16.mxu0 %v4607_v38  ;;  %3849 = vmatpush3.bf16.msra.mxu1 %v4670_v51  ;;  %v4683_v38 = vld [vmem:[%s6089_s3 + $0x7c] ss:$12 sps:$4 sm:$0xff]   ;;  %v4698_v51 = vld [vmem:[%s6089_s3 + $0xc4] ss:$12 sps:$4 sm:$0xff]  }
  0x6a   : > { %4530 = vmatprep.subr.msk.bf16.mxu1 %vm1026_vm0, %v4674_v54  ;;  %v4741_v54 = vld [vmem:[%s5062_s15 + $0x30] ss:$12 sps:$4 sm:$0xff]  }
  0x6b   : > { %1223 = vmatmul.mubr.bf16.gmra.mrb[4].mxu1 %v4642_v56 }
  0x6c   : > { %1059 = vmatpush1.bf16.msra.mxu0 %v4609_v41  ;;  %1230 = vmatprep.mubr.bf16.mxu1 %v4650_v57  ;;  %v4746_v41 = vld [vmem:[%s6089_s3 + $0x1a0] ss:$12 sps:$4 sm:$0xff]  }
  0x6d   : > { %1060 = vmatprep.subr.bf16.mxu0 %v4610_v42  ;;  %3851 = vmatpush3.bf16.msra.mxu1 %v1034_v58  ;;  %v4681_v42 = vld [vmem:[%s6089_s3 + $0x78] ss:$12 sps:$4 sm:$0xff]   ;;  %v4708_v58 = vld [vmem:[%s6089_s3 + $0xf0] ss:$12 sps:$4 sm:$0xff]  }
  0x6e   : > { %3691 = vmatprep.subr.bf16.mxu1 %v4679_v59  ;;  %v4715_v59 = vld [vmem:[%s6089_s3 + $0x10c] ss:$12 sps:$4 sm:$0xff]  }
  0x70   : > { %1061 = vmatpush1.bf16.msra.mxu0 %v4612_v44  ;;  %v4750_v44 = vld [vmem:[%s6089_s3 + $0x1b8] ss:$12 sps:$4 sm:$0x3f]  }
  0x71   : > { %1062 = vmatprep.subr.bf16.mxu0 %v4615_v45  ;;  %v4686_v45 = vld [vmem:[%s6089_s3 + $0x90] ss:$12 sps:$4 sm:$0xff]   ;;  %v1825_v49 = vsel %vm1026_vm0, %v4750_v44, 0 }
  0x73   : > { %1231 = vmatmul.mubr.bf16.gmra.mrb[8].mxu1 %v4652_v0 }
  0x74   : > { %1063 = vmatpush1.bf16.msra.mxu0 %v4617_v46  ;;  %1238 = vmatprep.mubr.bf16.mxu1 %v4655_v2  ;;  %v4693_v46 = vld [vmem:[%s6089_s3 + $0xac] ss:$12 sps:$4 sm:$0xff]  }
  0x75   : > { %1064 = vmatprep.subr.bf16.mxu0 %v4620_v50  ;;  %v4691_v50 = vld [vmem:[%s6089_s3 + $0xa8] ss:$12 sps:$4 sm:$0xff]  }
  0x78   : > { %1065 = vmatpush1.bf16.msra.mxu0 %v4622_v52  ;;  %v4696_v52 = vld [vmem:[%s6089_s3 + $0xc0] ss:$12 sps:$4 sm:$0xff]  }
  0x79   : > { %1066 = vmatprep.subr.bf16.mxu0 %v4625_v53  ;;  %v4705_v53 = vld [vmem:[%s6089_s3 + $0xdc] ss:$12 sps:$4 sm:$0xff]  }
  0x7b   : > { %1239 = vmatmul.mubr.bf16.gmra.mrb[12].mxu1 %v4658_v6 }
  0x7c   : > { %1067 = vmatpush1.bf16.msra.mxu0 %v4627_v55  ;;  %3852 = vmatprep.mubr.msk.bf16.mxu1 %vm1013_vm1, %v4662_v7  ;;  %v4743_v55 = vld [vmem:[%s5062_s15 + $0x4c] ss:$12 sps:$4 sm:$0xff]  }
  0x7d   : > { %1109 = vmatprep.subr.bf16.mxu0 %v4635_v60  ;;  %v4745_v60 = vld [vmem:[%s5062_s15 + $0x48] ss:$12 sps:$4 sm:$0xff]  }
  0x7f   : > { %1069 = vmatmul.mubr.bf16.vlgmr.msra.gmra.mrb[0].mxu0 %v4630_v47  ;;  %v5387_v47 = vld [vmem:[%s5062_s15 + $0x18] ss:$12 sps:$4 sm:$0xff]  }
  0x80   : > { %1110 = vmatpush1.bf16.msra.mxu0 %v4633_v61  ;;  %1078 = vmatprep.mubr.bf16.mxu0 %v4640_v48  ;;  %v5390_v48 = vld [vmem:[%s5062_s15 + $0x34] ss:$12 sps:$4 sm:$0xff]  }
  0x81   : > { %1111 = vmatprep.subr.bf16.mxu0 %v4647_v62  ;;  %v4751_v61 = vld [vmem:[%s5062_s15 + $0x8] ss:$12 sps:$4 sm:$0xff]  }
  0x82   : > { %v4713_v62 = vld [vmem:[%s6089_s3 + $0x108] ss:$12 sps:$4 sm:$0xff]  }
  0x83   : > { %3853 = vmatmul.mubr.msk.bf16.vlgmr.msra.gmra.mrb[16].mxu1 %vm1013_vm1, %v4678_v8 }
  0x84   : > { %1112 = vmatpush1.bf16.msra.mxu0 %v4645_v63  ;;  %3692 = vmatpush3.bf16.msra.mxu1 %v4680_v9  ;;  %v4720_v63 = vld [vmem:[%s6089_s3 + $0x124] ss:$12 sps:$4 sm:$0xff]   ;;  %v4733_v9 = vld [vmem:[%s6089_s3 + $0x168] ss:$12 sps:$4 sm:$0xff]  }
  0x85   : > { %3528 = vmatprep.subr.msk.bf16.mxu0 %vm1026_vm0, %v4653_v1  ;;  %3856 = vmatprep.mubr.msk.bf16.mxu1 %vm1013_vm1, %v5263_v10  ;;  %v4726_v1 = vld [vmem:[%s6089_s3 + $0x13c] ss:$12 sps:$4 sm:$0xff]  }
  0x86   : > { %3693 = vmatprep.subr.bf16.mxu1 %v4684_v11  ;;  %v4736_v11 = vld [vmem:[%s6089_s3 + $0x180] ss:$12 sps:$4 sm:$0xff]  }
  0x87   : > { %1079 = vmatmul.mubr.bf16.gmra.mrb[4].mxu0 %v4642_v56  ;;  %v4703_v56 = vld [vmem:[%s6089_s3 + $0xd8] ss:$12 sps:$4 sm:$0xff]  }
  0x88   : > { %1088 = vmatprep.mubr.bf16.mxu0 %v4650_v57  ;;  %1114 = vmatpush1.bf16.msra.mxu0 %v1028_v5  ;;  %v4710_v57 = vld [vmem:[%s6089_s3 + $0xf4] ss:$12 sps:$4 sm:$0xff]  }
  0x89   : > { %1827 = vmatprep.subr.bf16.mxu0 %v4661_v4  ;;  %3694 = vmatpush3.bf16.msra.mxu1 %v4685_v12  ;;  %v4724_v4 = vld [vmem:[%s6089_s3 + $0x138] ss:$12 sps:$4 sm:$0xff]   ;;  %v4729_v5 = vld [vmem:[%s6089_s3 + $0x154] ss:$12 sps:$4 sm:$0xff]   ;;  %v4749_v12 = vld [vmem:[%s6089_s3 + $0x19c] ss:$12 sps:$4 sm:$0xff]  }
  0x8a   : > { %3695 = vmatprep.subr.bf16.mxu1 %v4689_v13  ;;  %v4747_v13 = vld [vmem:[%s6089_s3 + $0x198] ss:$12 sps:$4 sm:$0xff]  }
  0x8b   : > { %3857 = vmatmul.mubr.msk.bf16.gmra.mrb[20].mxu1 %vm1013_vm1, %v5278_v14 }
  0x8c   : > { %2005 = vmatprep.mubr.bf16.mxu1 %v5284_v16 }
  0x8d   : > { %3696 = vmatpush3.bf16.msra.mxu1 %v4690_v15  ;;  %v4755_v15 = vld [vmem:[%s6089_s3 + $0x1b0] ss:$12 sps:$4 sm:$0x3f]  }
  0x8e   : > { %3697 = vmatprep.subr.bf16.mxu1 %v4694_v17  ;;  %v637_v17 = vlaneseq }
  0x8f   : > { %1089 = vmatmul.mubr.bf16.gmra.mrb[8].mxu0 %v4652_v0  ;;  %v4718_v0 = vld [vmem:[%s6089_s3 + $0x120] ss:$12 sps:$4 sm:$0xff]  }
  0x90   : > { %1098 = vmatprep.mubr.bf16.mxu0 %v4655_v2  ;;  %v4752_v2 = vld [vmem:[%s5062_s15 + $0x20] ss:$12 sps:$4 sm:$0xff]  }
  0x91   : > { %3698 = vmatpush3.bf16.msra.mxu1 %v4695_v19  ;;  %v638_v19 = vshrl.u32 %v637_v17, 7  ;;  %v5523_v17 = vld [vmem:[#allocation7 + $0x8] sm:$0xff] }
  0x92   : > { %3699 = vmatprep.subr.bf16.mxu1 %v4701_v20 }
  0x93   : > { %v647_v20 = vsub.s32 2, %v638_v19 }
  0x95   : > { %3700 = vmatpush3.bf16.msra.mxu1 %v4702_v23  ;;  %v5498_v23 = vsub.s32 0, %v638_v19 }
  0x96   : > { %3701 = vmatprep.subr.bf16.mxu1 %v4706_v24  ;;  %v635_v24 = vld [vmem:[%s6090_s4] sm:$0x7] }
  0x97   : > { %1099 = vmatmul.mubr.bf16.gmra.mrb[12].mxu0 %v4658_v6  ;;  %v4727_v6 = vld [vmem:[%s6089_s3 + $0x150] ss:$12 sps:$4 sm:$0xff]  }
  0x98   : > { %1141 = vmatprep.mubr.bf16.mxu0 %v4918_v18 }
  0x99   : > { %3702 = vmatpush3.bf16.msra.mxu1 %v4707_v27 }
  0x9a   : > { %3703 = vmatprep.subr.bf16.mxu1 %v4711_v28 }
  0x9d   : > { %3704 = vmatpush3.bf16.msra.mxu1 %v4712_v31 }
  0x9e   : > { %3705 = vmatprep.subr.bf16.mxu1 %v4716_v32 }
  0x9f   : > { %3529 = vmatmul.mubr.msk.bf16.vlgmr.msra.gmra.mrb[0].mxu0 %vm1013_vm1, %v4662_v7  ;;  %v4735_v7 = vld [vmem:[%s6089_s3 + $0x16c] ss:$12 sps:$4 sm:$0xff]  }
  0xa0   : > { %1828 = vmatpush1.bf16.msra.mxu0 %v4659_v21  ;;  %1151 = vmatprep.mubr.bf16.mxu0 %v4918_v18  ;;  %v1428_v21 = vld [vmem:[%s6091_s5] sm:$0x7] }
  0xa1   : > { %1829 = vmatprep.subr.bf16.mxu0 %v4665_v22  ;;  %3706 = vmatpush3.bf16.msra.mxu1 %v4717_v35  ;;  %v5496_v22 = vrot.slane %v1428_v21, %v647_v20 }
  0xa2   : > { %3860 = vmatprep.subr.bf16.mxu1 %v4742_v36 }
  0xa4   : > { %1830 = vmatpush1.bf16.msra.mxu0 %v4663_v25  ;;  %2006 = vmatmul.mubr.bf16.vlgmr.msra.gmra.mrb[24].mxu1 %v5358_v39  ;;  %v5504_v25 = vrot.slane %v635_v24, %v5498_v23 }
  0xa5   : > { %1831 = vmatprep.subr.bf16.mxu0 %v4669_v26  ;;  %2013 = vmatprep.mubr.bf16.mxu1 %v5361_v40 }
  0xa6   : > { %3861 = vmatpush3.bf16.msra.mxu1 %v4742_v36 }
  0xa7   : > { %3530 = vmatmul.mubr.msk.bf16.gmra.mrb[4].mxu0 %vm1013_vm1, %v4678_v8  ;;  %3862 = vmatprep.subr.bf16.mxu1 %v4746_v41  ;;  %v4757_v8 = vld [vmem:[%s5062_s15 + $0x50] ss:$12 sps:$4 sm:$0xff]  }
  0xa8   : > { %1832 = vmatpush1.bf16.msra.mxu0 %v4667_v29  ;;  %1161 = vmatprep.mubr.bf16.mxu0 %v4918_v18 }
  0xa9   : > { %1833 = vmatprep.subr.bf16.mxu0 %v4673_v30 }
  0xaa   : > { %3863 = vmatpush3.bf16.msra.mxu1 %v4746_v41 }
  0xab   : > { %4531 = vmatprep.subr.msk.bf16.mxu1 %vm1026_vm0, %v4750_v44 }
  0xac   : > { %1834 = vmatpush1.bf16.msra.mxu0 %v4671_v33  ;;  %2014 = vmatmul.mubr.bf16.gmra.mrb[28].mxu1 %v5387_v47  ;;  %v643_v33 = vsub.s32 1, %v638_v19  ;;  %v5525_v19 = vld [vmem:[#allocation7 + $0x10] sm:$0xff] }
  0xad   : > { %1835 = vmatprep.subr.bf16.mxu0 %v4677_v34  ;;  %2021 = vmatprep.mubr.bf16.mxu1 %v5390_v48 }
  0xae   : > { %3865 = vmatpush3.bf16.msra.mxu1 %v1825_v49  ;;  %v5515_v41 = vrot.slane %v1428_v21, %v643_v33 }
  0xaf   : > { %3531 = vmatmul.mubr.msk.bf16.gmra.mrb[8].mxu0 %vm1013_vm1, %v5263_v10  ;;  %v4738_v10 = vld [vmem:[%s6089_s3 + $0x184] ss:$12 sps:$4 sm:$0xff]  }
  0xb0   : > { %1836 = vmatpush1.bf16.msra.mxu0 %v4675_v37  ;;  %1171 = vmatprep.mubr.bf16.mxu0 %v4918_v18 }
  0xb1   : > { %1837 = vmatprep.subr.bf16.mxu0 %v4683_v38 }
  0xb4   : > { %1838 = vmatpush1.bf16.msra.mxu0 %v4681_v42  ;;  %2022 = vmatmul.mubr.bf16.gmra.mrb[32].mxu1 %v4741_v54 }
  0xb5   : > { %1839 = vmatprep.subr.bf16.mxu0 %v4688_v43  ;;  %2029 = vmatprep.mubr.bf16.mxu1 %v4743_v55 }
  0xb7   : > { %3532 = vmatmul.mubr.msk.bf16.gmra.mrb[12].mxu0 %vm1013_vm1, %v5278_v14  ;;  %v4753_v14 = vld [vmem:[%s6089_s3 + $0x1b4] ss:$12 sps:$4 sm:$0x3f]  }
  0xb8   : > { %1840 = vmatpush1.bf16.msra.mxu0 %v4686_v45  ;;  %1859 = vmatprep.mubr.bf16.mxu0 %v5284_v16  ;;  %v1819_v16 = vsel %vm1026_vm0, %v4755_v15, 0 }
  0xb9   : > { %1841 = vmatprep.subr.bf16.mxu0 %v4693_v46 }
  0xbc   : > { %1842 = vmatpush1.bf16.msra.mxu0 %v4691_v50  ;;  %2030 = vmatmul.mubr.bf16.gmra.mrb[36].mxu1 %v4745_v60 }
  0xbd   : > { %1843 = vmatprep.subr.bf16.mxu0 %v4698_v51  ;;  %3866 = vmatprep.mubr.msk.bf16.mxu1 %vm1013_vm1, %v4751_v61 }
  0xc0   : > { %1844 = vmatpush1.bf16.msra.mxu0 %v4696_v52 }
  0xc1   : > { %1845 = vmatprep.subr.bf16.mxu0 %v4705_v53  ;;  %v648_v53 = vrot.slane %v635_v24, %v647_v20  ;;  %v5527_v20 = vld [vmem:[#allocation7 + $0x18] sm:$0xff] }
  0xc4   : > { %1846 = vmatpush1.bf16.msra.mxu0 %v4703_v56  ;;  %3867 = vmatmul.mubr.msk.bf16.vlgmr.msra.gmra.mrb[40].mxu1 %vm1013_vm1, %v4752_v2 }
  0xc5   : > { %1847 = vmatprep.subr.bf16.mxu0 %v4710_v57  ;;  %3870 = vmatprep.mubr.msk.bf16.mxu1 %vm1013_vm1, %v4756_v3 }
  0xc8   : > { %1848 = vmatpush1.bf16.msra.mxu0 %v4708_v58 }
  0xc9   : > { %1849 = vmatprep.subr.bf16.mxu0 %v4715_v59 }
  0xcc   : > { %1850 = vmatpush1.bf16.msra.mxu0 %v4713_v62  ;;  %3871 = vmatmul.mubr.msk.bf16.gmra.mrb[44].mxu1 %vm1013_vm1, %v4757_v8 }
  0xcd   : > { %1851 = vmatprep.subr.bf16.mxu0 %v4720_v63 }
  0xd0   : > { %1852 = vmatpush1.bf16.msra.mxu0 %v4718_v0 }
  0xd1   : > { %1853 = vmatprep.subr.bf16.mxu0 %v4726_v1 }
  0xd4   : > { %1854 = vmatpush1.bf16.msra.mxu0 %v4724_v4 }
  0xd5   : > { %1855 = vmatprep.subr.bf16.mxu0 %v4729_v5 }
  0xd8   : > { %1856 = vmatpush1.bf16.msra.mxu0 %v4727_v6 }
  0xd9   : > { %1857 = vmatprep.subr.bf16.mxu0 %v4735_v7 }
  0xdc   : > { %1858 = vmatpush1.bf16.msra.mxu0 %v4733_v9 }
  0xdd   : > { %1900 = vmatprep.subr.bf16.mxu0 %v4738_v10 }
  0xdf   : > { %1860 = vmatmul.mubr.bf16.vlgmr.msra.gmra.mrb[12].mxu0 %v5358_v39  ;;  %v5513_v39 = vrot.slane %v635_v24, %v643_v33  ;;  %v5531_v24 = vld [vmem:[#allocation7 + $0x28] sm:$0xff] }
  0xe0   : > { %1901 = vmatpush1.bf16.msra.mxu0 %v4736_v11  ;;  %1869 = vmatprep.mubr.bf16.mxu0 %v5361_v40  ;;  %v5540_v33 = vld [vmem:[#allocation7 + $0x48] sm:$0xff] }
  0xe1   : > { %1902 = vmatprep.subr.bf16.mxu0 %v4749_v12  ;;  %v5519_v42 = vadd.f32 %v5515_v41, %v5513_v39 }
  0xe4   : > { %1903 = vmatpush1.bf16.msra.mxu0 %v4747_v13 }
  0xe5   : > { %3606 = vmatprep.subr.msk.bf16.mxu0 %vm1026_vm0, %v4753_v14 }
  0xe7   : > { %1870 = vmatmul.mubr.bf16.gmra.mrb[8].mxu0 %v5387_v47 }
  0xe8   : > { %1879 = vmatprep.mubr.bf16.mxu0 %v5390_v48  ;;  %1905 = vmatpush1.bf16.msra.mxu0 %v1819_v16  ;;  %v5521_v16 = vld [vmem:[#allocation7] sm:$0xff] }
  0xef   : > { %1880 = vmatmul.mubr.bf16.gmra.mrb[4].mxu0 %v4741_v54 }
  0xf0   : > { %1889 = vmatprep.mubr.bf16.mxu0 %v4743_v55 }
  0xf7   : > { %1890 = vmatmul.mubr.bf16.gmra.mrb[16].mxu0 %v4745_v60 }
  0xf8   : > { %1932 = vmatprep.mubr.bf16.mxu0 %v4918_v18 }
  0xff   : > { %3607 = vmatmul.mubr.msk.bf16.vlgmr.msra.gmra.mrb[12].mxu0 %vm1013_vm1, %v4751_v61 }
 0x100   : > { %1942 = vmatprep.mubr.bf16.mxu0 %v4918_v18 }
 0x107   : > { %3608 = vmatmul.mubr.msk.bf16.gmra.mrb[8].mxu0 %vm1013_vm1, %v4752_v2 }
 0x108   : > { %1952 = vmatprep.mubr.bf16.mxu0 %v4918_v18 }
 0x10f   : > { %3609 = vmatmul.mubr.msk.bf16.gmra.mrb[4].mxu0 %vm1013_vm1, %v4756_v3 }
 0x110   : > { %1962 = vmatprep.mubr.bf16.mxu0 %v4918_v18  ;;  %v5507_v18 = vrot.slane %v1428_v21, %v5498_v23  ;;  %v5529_v21 = vld [vmem:[#allocation7 + $0x20] sm:$0xff] }
 0x112   : > { %v5511_v26 = vadd.f32 %v5507_v18, %v5504_v25 }
 0x117   : > { %3610 = vmatmul.mubr.msk.bf16.gmra.mrb[16].mxu0 %vm1013_vm1, %v4757_v8 }
 0x136   : > { %v3660_v27 = vpop.f32.mrb[0].mxu1 }
 0x137   : > { %v3661_v28 = vpop.f32.mrb[1].mxu1 }
 0x138   : > { %v3662_v29 = vadd.f32 %v3661_v28, %v3660_v27  ;;  %v3663_v30 = vpop.f32.mrb[2].mxu1  ;;  %v5533_v28 = vld [vmem:[#allocation7 + $0x30] sm:$0xff] }
 0x139   : > { %v3664_v31 = vpop.f32.mrb[3].mxu1 }
 0x13a   : > { %v3665_v32 = vadd.f32 %v3664_v31, %v3663_v30  ;;  %v1217_v57 = vadd.f32 %v3662_v29, %v648_v53  ;;  %v5535_v29 = vld [vmem:[#allocation7 + $0x38] sm:$0xff]  ;;  %v5537_v30 = vld [vmem:[#allocation7 + $0x40] sm:$0xff] }
 0x13b   : > { %6108 = vst [vmem:[#allocation10_spill] sm:$0xff] %v5537_v30 }
 0x13c   : > { %v1220_v60 = vadd.f32 %v3665_v32, %v648_v53 }
 0x13e   : > { %v3666_v34 = vpop.f32.mrb[4].mxu1 }
 0x13f   : > { %v3667_v35 = vpop.f32.mrb[5].mxu1 }
 0x140   : > { %v3668_v36 = vadd.f32 %v3667_v35, %v3666_v34  ;;  %v3669_v37 = vpop.f32.mrb[6].mxu1  ;;  %v5542_v34 = vld [vmem:[#allocation7 + $0x50] sm:$0xff]  ;;  %v5544_v35 = vld [vmem:[#allocation7 + $0x58] sm:$0xff] }
 0x141   : > { %v3670_v38 = vpop.f32.mrb[7].mxu1  ;;  %6109 = vst [vmem:[#allocation11_spill] sm:$0xff] %v5544_v35 }
 0x142   : > { %v3671_v40 = vadd.f32 %v3670_v38, %v3669_v37  ;;  %v1225_v56 = vadd.f32 %v3668_v36, %v648_v53  ;;  %v5547_v38 = vld [vmem:[#allocation7 + $0x60] sm:$0xff] }
 0x144   : > { %v1228_v58 = vadd.f32 %v3671_v40, %v648_v53  ;;  %v5549_v40 = vld [vmem:[#allocation7 + $0x68] sm:$0xff] }
 0x146   : > { %v3672_v43 = vpop.f32.mrb[8].mxu1 }
 0x147   : > { %v3673_v44 = vpop.f32.mrb[9].mxu1 }
 0x148   : > { %v3674_v45 = vadd.f32 %v3673_v44, %v3672_v43  ;;  %v3675_v46 = vpop.f32.mrb[10].mxu1  ;;  %v5551_v43 = vld [vmem:[#allocation7 + $0x70] sm:$0xff] }
 0x149   : > { %v3676_v47 = vpop.f32.mrb[11].mxu1  ;;  %6110 = vst [vmem:[#allocation12_spill] sm:$0xff] %v5551_v43 }
 0x14a   : > { %v3677_v48 = vadd.f32 %v3676_v47, %v3675_v46  ;;  %v1233_v5 = vadd.f32 %v3674_v45, %v648_v53  ;;  %v5554_v46 = vld [vmem:[#allocation7 + $0x78] sm:$0xff]  ;;  %v5556_v47 = vld [vmem:[#allocation7 + $0x80] sm:$0xff] }
 0x14c   : > { %v1236_v8 = vadd.f32 %v3677_v48, %v648_v53  ;;  %v5558_v48 = vld [vmem:[#allocation7 + $0x88] sm:$0xff] }
 0x14d   : > { %6111 = vst [vmem:[#allocation13_spill] sm:$0xff] %v5558_v48 }
 0x14e   : > { %v3678_v49 = vpop.f32.mrb[12].mxu1 }
 0x14f   : > { %v3679_v50 = vpop.f32.mrb[13].mxu1 }
 0x150   : > { %v3680_v51 = vadd.f32 %v3679_v50, %v3678_v49  ;;  %v3681_v52 = vpop.f32.mrb[14].mxu1  ;;  %v5561_v50 = vld [vmem:[#allocation7 + $0x90] sm:$0xff] }
 0x151   : > { %v3682_v54 = vpop.f32.mrb[15].mxu1 }
 0x152   : > { %v3683_v55 = vadd.f32 %v3682_v54, %v3681_v52  ;;  %v1241_v4 = vadd.f32 %v3680_v51, %v648_v53  ;;  %v5563_v51 = vld [vmem:[#allocation7 + $0x98] sm:$0xff]  ;;  %v5565_v52 = vld [vmem:[#allocation7 + $0xa0] sm:$0xff] }
 0x153   : > { %6112 = vst [vmem:[#allocation14_spill] sm:$0xff] %v5565_v52  ;;  %v5571_v54 = vld [vmem:[#allocation7 + $0xb8] sm:$0xff] }
 0x154   : > { %v1244_v6 = vadd.f32 %v3683_v55, %v648_v53  ;;  %v5567_v53 = vld [vmem:[#allocation7 + $0xa8] sm:$0xff]  ;;  %6113 = vst [vmem:[#allocation15_spill] sm:$0xff] %v5571_v54  ;;  %v5573_v55 = vld [vmem:[#allocation7 + $0xc0] sm:$0xff] }
 0x156   : > { %v3854_v59 = vpop.f32.mrb[16].mxu1 }
 0x157   : > { %v1290_v61 = vadd.f32 %v3854_v59, %v1225_v56  ;;  %v1281_v62 = vpop.f32.mrb[17].mxu1  ;;  %v5575_v56 = vld [vmem:[#allocation7 + $0xc8] sm:$0xff] }
 0x158   : > { %v1282_v63 = vadd.f32 %v1281_v62, %v1217_v57  ;;  %v3855_v0 = vpop.f32.mrb[18].mxu1  ;;  %v5577_v57 = vld [vmem:[#allocation7 + $0xd0] sm:$0xff]  ;;  %v5583_v59 = vld [vmem:[#allocation7 + $0xe8] sm:$0xff]  ;;  %v5589_v62 = vld [vmem:[#allocation7 + $0x100] sm:$0xff] }
 0x159   : > { %1320 = vst [vmem:[#allocation2 + $0x40] sm:$0xff] %v1290_v61  ;;  %v1293_v1 = vadd.f32 %v3855_v0, %v1228_v58  ;;  %v1284_v2 = vpop.f32.mrb[19].mxu1  ;;  %6114 = vst [vmem:[#allocation16_spill] sm:$0xff] %v5577_v57  ;;  %v5581_v58 = vld [vmem:[#allocation7 + $0xe0] sm:$0xff]  ;;  %v5587_v61 = vld [vmem:[#allocation7 + $0xf8] sm:$0xff] }
 0x15a   : > { %1314 = vst [vmem:[#allocation2 + $0x10] sm:$0xff] %v1282_v63  ;;  %v1285_v3 = vadd.f32 %v1284_v2, %v1220_v60  ;;  %6115 = vst [vmem:[#allocation17_spill] sm:$0xff] %v5583_v59  ;;  %v5585_v60 = vld [vmem:[#allocation7 + $0xf0] sm:$0xff]  ;;  %v5591_v63 = vld [vmem:[#allocation7 + $0x108] sm:$0xff] }
 0x15b   : > { %1323 = vst [vmem:[#allocation2 + $0x58] sm:$0xff] %v1293_v1  ;;  %6116 = vst [vmem:[#allocation18_spill] sm:$0xff] %v5589_v62  ;;  %v5593_v0 = vld [vmem:[#allocation7 + $0x110] sm:$0xff]  ;;  %v5595_v1 = vld [vmem:[#allocation7 + $0x118] sm:$0xff] }
 0x15c   : > { %1317 = vst [vmem:[#allocation2 + $0x28] sm:$0xff] %v1285_v3  ;;  %6117 = vst [vmem:[#allocation19_spill] sm:$0xff] %v5595_v1  ;;  %v5597_v2 = vld [vmem:[#allocation7 + $0x120] sm:$0xff]  ;;  %v5599_v3 = vld [vmem:[#allocation7 + $0x128] sm:$0xff] }
 0x15e   : > { %v3858_v7 = vpop.f32.mrb[20].mxu1 }
 0x15f   : > { %v1306_v9 = vadd.f32 %v3858_v7, %v1241_v4  ;;  %v1297_v10 = vpop.f32.mrb[21].mxu1  ;;  %v5601_v4 = vld [vmem:[#allocation7 + $0x130] sm:$0xff]  ;;  %v5607_v7 = vld [vmem:[#allocation7 + $0x148] sm:$0xff] }
 0x160   : > { %v1298_v11 = vadd.f32 %v1297_v10, %v1233_v5  ;;  %v3859_v12 = vpop.f32.mrb[22].mxu1  ;;  %6118 = vst [vmem:[#allocation20_spill] sm:$0xff] %v5601_v4  ;;  %v5603_v5 = vld [vmem:[#allocation7 + $0x138] sm:$0xff]  ;;  %6119 = vst [vmem:[#allocation21_spill] sm:$0xff] %v5607_v7  ;;  %v5613_v10 = vld [vmem:[#allocation7 + $0x160] sm:$0xff] }
 0x161   : > { %1332 = vst [vmem:[#allocation2 + $0xa0] sm:$0xff] %v1306_v9  ;;  %v1309_v13 = vadd.f32 %v3859_v12, %v1244_v6  ;;  %v1300_v14 = vpop.f32.mrb[23].mxu1  ;;  %v5605_v6 = vld [vmem:[#allocation7 + $0x140] sm:$0xff]  ;;  %v5611_v9 = vld [vmem:[#allocation7 + $0x158] sm:$0xff]  ;;  %6120 = vst [vmem:[#allocation22_spill] sm:$0xff] %v5613_v10 }
 0x162   : > { %1326 = vst [vmem:[#allocation2 + $0x70] sm:$0xff] %v1298_v11  ;;  %v1301_v15 = vadd.f32 %v1300_v14, %v1236_v8  ;;  %v5609_v8 = vld [vmem:[#allocation7 + $0x150] sm:$0xff]  ;;  %v5615_v11 = vld [vmem:[#allocation7 + $0x168] sm:$0xff]  ;;  %v5624_v14 = vld [vmem:[%s6093_s7] sm:$0x1] }
 0x163   : > { %1335 = vst [vmem:[#allocation2 + $0xb8] sm:$0xff] %v1309_v13  ;;  %v5617_v12 = vld [vmem:[#allocation7 + $0x170] sm:$0xff]  ;;  %v5619_v13 = vld [vmem:[#allocation7 + $0x178] sm:$0xff] }
 0x164   : > { %1329 = vst [vmem:[#allocation2 + $0x88] sm:$0xff] %v1301_v15  ;;  %6121 = vst [vmem:[#allocation23_spill] sm:$0xff] %v5619_v13 }
 0x172   : > { %v1143_v27 = vpop.f32.mrb[0].mxu0 }
 0x173   : > { %v4404_v31 = vadd.f32 %v1143_v27, %v5504_v25  ;;  %v1145_v32 = vpop.f32.mrb[1].mxu0 }
 0x174   : > { %v4405_v36 = vadd.f32 %v1145_v32, %v5513_v39  ;;  %v1147_v37 = vpop.f32.mrb[2].mxu0 }
 0x175   : > { %1312 = vst [vmem:[#allocation2] sm:$0xff] %v4404_v31  ;;  %v4406_v44 = vadd.f32 %v1147_v37, %v5504_v25  ;;  %v1149_v45 = vpop.f32.mrb[3].mxu0  ;;  %v5569_v25 = vld [vmem:[#allocation7 + $0xb0] sm:$0xff] }
 0x176   : > { %1313 = vst [vmem:[#allocation2 + $0x8] sm:$0xff] %v4405_v36  ;;  %v4407_v49 = vadd.f32 %v1149_v45, %v5513_v39  ;;  %v5579_v39 = vld [vmem:[#allocation7 + $0xd8] sm:$0xff] }
 0x177   : > { %1315 = vst [vmem:[#allocation2 + $0x18] sm:$0xff] %v4406_v44  ;;  %v3707_v15 = vpop.f32.mrb[24].mxu1 }
 0x178   : > { %1316 = vst [vmem:[#allocation2 + $0x20] sm:$0xff] %v4407_v49  ;;  %v3708_v27 = vpop.f32.mrb[25].mxu1 }
 0x179   : > { %v3709_v31 = vadd.f32 %v3708_v27, %v3707_v15  ;;  %v3710_v32 = vpop.f32.mrb[26].mxu1 }
 0x17a   : > { %v3711_v36 = vpop.f32.mrb[27].mxu1 }
 0x17b   : > { %v3712_v37 = vadd.f32 %v3711_v36, %v3710_v32  ;;  %v2008_v44 = vadd.f32 %v3709_v31, %v5496_v22 }
 0x17d   : > { %v2011_v45 = vadd.f32 %v3712_v37, %v5496_v22 }
 0x17f   : > { %v3713_v49 = vpop.f32.mrb[28].mxu1 }
 0x180   : > { %v3714_v10 = vpop.f32.mrb[29].mxu1 }
 0x181   : > { %v3715_v7 = vadd.f32 %v3714_v10, %v3713_v49  ;;  %v3716_v4 = vpop.f32.mrb[30].mxu1 }
 0x182   : > { %v3717_v13 = vpop.f32.mrb[31].mxu1 }
 0x183   : > { %v3718_v1 = vadd.f32 %v3717_v13, %v3716_v4  ;;  %v2016_v62 = vadd.f32 %v3715_v7, %v5496_v22 }
 0x185   : > { %v2019_v59 = vadd.f32 %v3718_v1, %v5496_v22 }
 0x187   : > { %v3719_v57 = vpop.f32.mrb[32].mxu1 }
 0x188   : > { %v3720_v54 = vpop.f32.mrb[33].mxu1 }
 0x189   : > { %v3721_v15 = vadd.f32 %v3720_v54, %v3719_v57  ;;  %v3722_v27 = vpop.f32.mrb[34].mxu1 }
 0x18a   : > { %v3723_v52 = vpop.f32.mrb[35].mxu1 }
 0x18b   : > { %v3724_v32 = vadd.f32 %v3723_v52, %v3722_v27  ;;  %v2024_v31 = vadd.f32 %v3721_v15, %v5496_v22 }
 0x18d   : > { %v2027_v36 = vadd.f32 %v3724_v32, %v5496_v22 }
 0x18f   : > { %v3725_v37 = vpop.f32.mrb[36].mxu1 }
 0x190   : > { %v3726_v48 = vpop.f32.mrb[37].mxu1 }
 0x191   : > { %v3727_v10 = vadd.f32 %v3726_v48, %v3725_v37  ;;  %v3728_v49 = vpop.f32.mrb[38].mxu1 }
 0x192   : > { %v3729_v43 = vpop.f32.mrb[39].mxu1 }
 0x193   : > { %v3730_v4 = vadd.f32 %v3729_v43, %v3728_v49  ;;  %v2032_v7 = vadd.f32 %v3727_v10, %v5496_v22 }
 0x195   : > { %v2035_v1 = vadd.f32 %v3730_v4, %v5496_v22 }
 0x197   : > { %v3868_v13 = vpop.f32.mrb[40].mxu1 }
 0x198   : > { %v2081_v35 = vadd.f32 %v3868_v13, %v2016_v62  ;;  %v2072_v54 = vpop.f32.mrb[41].mxu1 }
 0x199   : > { %v2073_v57 = vadd.f32 %v2072_v54, %v2008_v44  ;;  %v3869_v30 = vpop.f32.mrb[42].mxu1 }
 0x19a   : > { %2111 = vst [vmem:[#allocation3 + $0x40] sm:$0xff] %v2081_v35  ;;  %v2084_v52 = vadd.f32 %v3869_v30, %v2019_v59  ;;  %v2075_v15 = vpop.f32.mrb[43].mxu1 }
 0x19b   : > { %2105 = vst [vmem:[#allocation3 + $0x10] sm:$0xff] %v2073_v57  ;;  %v2076_v27 = vadd.f32 %v2075_v15, %v2011_v45 }
 0x19c   : > { %2114 = vst [vmem:[#allocation3 + $0x58] sm:$0xff] %v2084_v52 }
 0x19d   : > { %2108 = vst [vmem:[#allocation3 + $0x28] sm:$0xff] %v2076_v27 }
 0x19f   : > { %v3872_v48 = vpop.f32.mrb[44].mxu1 }
 0x1a0   : > { %v2097_v32 = vadd.f32 %v3872_v48, %v2032_v7  ;;  %v2088_v37 = vpop.f32.mrb[45].mxu1 }
 0x1a1   : > { %v2089_v43 = vadd.f32 %v2088_v37, %v2024_v31  ;;  %v3873_v49 = vpop.f32.mrb[46].mxu1 }
 0x1a2   : > { %2123 = vst [vmem:[#allocation3 + $0xa0] sm:$0xff] %v2097_v32  ;;  %v2100_v10 = vadd.f32 %v3873_v49, %v2035_v1  ;;  %v2091_v22 = vpop.f32.mrb[47].mxu1 }
 0x1a3   : > { %2117 = vst [vmem:[#allocation3 + $0x70] sm:$0xff] %v2089_v43  ;;  %v2092_v62 = vadd.f32 %v2091_v22, %v2027_v36 }
 0x1a4   : > { %2126 = vst [vmem:[#allocation3 + $0xb8] sm:$0xff] %v2100_v10 }
 0x1a5   : > { %2120 = vst [vmem:[#allocation3 + $0x88] sm:$0xff] %v2092_v62 }
 0x1d2   : > { %v1934_v44 = vpop.f32.mrb[12].mxu0 }
 0x1d3   : > { %v5635_v30 = vadd.f32 %v5511_v26, %v1934_v44  ;;  %v1936_v35 = vpop.f32.mrb[13].mxu0 }
 0x1d4   : > { %v5638_v59 = vadd.f32 %v5519_v42, %v1936_v35  ;;  %v1938_v45 = vpop.f32.mrb[14].mxu0 }
 0x1d5   : > { %6122 = vst [vmem:[#allocation24_spill] sm:$0xff] %v5635_v30  ;;  %v5641_v4 = vadd.f32 %v5511_v26, %v1938_v45  ;;  %v1940_v31 = vpop.f32.mrb[15].mxu0  ;;  %v2181_v30 = vld [vmem:[#allocation2 + $0x10] sm:$0xff] (!%p3458_p6) }
 0x1d6   : > { %6123 = vst [vmem:[#allocation25_spill] sm:$0xff] %v5638_v59  ;;  %v5644_v7 = vadd.f32 %v5519_v42, %v1940_v31 }
 0x1d7   : > { %6124 = vst [vmem:[#allocation26_spill] sm:$0xff] %v5641_v4 }
 0x1d8   : > { %6125 = vst [vmem:[#allocation27_spill] sm:$0xff] %v5644_v7 }
 0x1da   : > { %v1944_v1 = vpop.f32.mrb[8].mxu0 }
 0x1db   : > { %v5647_v36 = vadd.f32 %v5511_v26, %v1944_v1  ;;  %v1946_v13 = vpop.f32.mrb[9].mxu0 }
 0x1dc   : > { %v5650_v54 = vadd.f32 %v5519_v42, %v1946_v13  ;;  %v1948_v57 = vpop.f32.mrb[10].mxu0 }
 0x1dd   : > { %v5653_v52 = vadd.f32 %v5511_v26, %v1948_v57  ;;  %v1950_v15 = vpop.f32.mrb[11].mxu0 }
 0x1de   : > { %v5656_v27 = vadd.f32 %v5519_v42, %v1950_v15 }
 0x1df   : > { %6126 = vst [vmem:[#allocation28_spill] sm:$0xff] %v5653_v52 }
 0x1e0   : > { %6127 = vst [vmem:[#allocation29_spill] sm:$0xff] %v5656_v27 }
 0x1e2   : > { %v1954_v48 = vpop.f32.mrb[4].mxu0 }
 0x1e3   : > { %v5659_v32 = vadd.f32 %v5511_v26, %v1954_v48  ;;  %v1956_v37 = vpop.f32.mrb[5].mxu0 }
 0x1e4   : > { %v5662_v43 = vadd.f32 %v5519_v42, %v1956_v37  ;;  %v1958_v49 = vpop.f32.mrb[6].mxu0 }
 0x1e5   : > { %v5665_v10 = vadd.f32 %v5511_v26, %v1958_v49  ;;  %v1960_v22 = vpop.f32.mrb[7].mxu0  ;;  %v2179_v26 = vld [vmem:[#allocation2] sm:$0xff] (!%p3458_p6) }
 0x1e6   : > { %v5668_v62 = vadd.f32 %v5519_v42, %v1960_v22  ;;  %v2180_v42 = vld [vmem:[#allocation2 + $0x8] sm:$0xff] (!%p3458_p6)  ;;  %v2182_v22 = vld [vmem:[#allocation2 + $0x18] sm:$0xff] (!%p3458_p6) }
 0x1ea   : > { %v1964_v44 = vpop.f32.mrb[16].mxu0  ;;  %2178 = sbr.rel (%p3458_p6) target bundleno = 549 (0x225), region = 84 }
 0x1eb   : > { %v4480_v35 = vadd.f32 %v1964_v44, %v5507_v18  ;;  %v1966_v45 = vpop.f32.mrb[17].mxu0  ;;  %v2183_v44 = vld [vmem:[#allocation2 + $0x20] sm:$0xff] (!%p3458_p6) }
 0x1ec   : > { %v4481_v31 = vadd.f32 %v1966_v45, %v5515_v41  ;;  %v1968_v1 = vpop.f32.mrb[18].mxu0 }
 0x1ed   : > { %2121 = vst [vmem:[#allocation3 + $0x90] sm:$0xff] %v4480_v35  ;;  %v4482_v13 = vadd.f32 %v1968_v1, %v5507_v18  ;;  %v1970_v57 = vpop.f32.mrb[19].mxu0 }
 0x1ee   : > { %2122 = vst [vmem:[#allocation3 + $0x98] sm:$0xff] %v4481_v31  ;;  %v4483_v15 = vadd.f32 %v1970_v57, %v5515_v41 }
 0x1ef   : > { %2124 = vst [vmem:[#allocation3 + $0xa8] sm:$0xff] %v4482_v13 }
 0x1f0   : > { %2125 = vst [vmem:[#allocation3 + $0xb0] sm:$0xff] %v4483_v15 }
 0x1f4   : > { %v2185_v48 = vld [vmem:[#allocation3 + $0x90] sm:$0xff] }
 0x1f5   : > { %v2186_v37 = vld [vmem:[#allocation3 + $0x98] sm:$0xff]  ;;  %v2191_v49 = vadd.f32 %v2185_v48, %v2179_v26 }
 0x1f6   : > { %v2192_v45 = vadd.f32 %v2186_v37, %v2180_v42  ;;  %v2188_v35 = vld [vmem:[#allocation3 + $0xa8] sm:$0xff] }
 0x1f7   : > { %v2189_v7 = vld [vmem:[#allocation3 + $0xb0] sm:$0xff]  ;;  %v3616_v18 = vmul.f32 -1.442695, %v2191_v49  ;;  %v2194_v1 = vadd.f32 %v2188_v35, %v2182_v22  ;;  %v2187_v49 = vld [vmem:[#allocation3 + $0xa0] sm:$0xff] }
 0x1f8   : > { %v2195_v31 = vadd.f32 %v2189_v7, %v2183_v44  ;;  %v3617_v13 = vmul.f32 -1.442695, %v2192_v45  ;;  %v2225_v7 = vrot.slane %v5624_v14, %v5498_v23  ;;  %v2184_v44 = vld [vmem:[#allocation2 + $0x28] sm:$0xff]  ;;  %v2190_v45 = vld [vmem:[#allocation3 + $0xb8] sm:$0xff]  ;;  %v2193_v35 = vadd.f32 %v2187_v49, %v2181_v30 }
 0x1f9   : > { %4758 = vpow2.f32 %v3616_v18  ;;  %v3618_v41 = vmul.f32 -1.442695, %v2194_v1 }
 0x1fa   : > { %v3619_v57 = vmul.f32 -1.442695, %v2195_v31  ;;  %v2196_v31 = vadd.f32 %v2190_v45, %v2184_v44 }
 0x1fb   : > { %4760 = vpow2.f32 %v3618_v41 }
 0x1fc   : > { %4762 = vpow2.f32 %v3617_v13 }
 0x1fd   : > { %4764 = vpow2.f32 %v3619_v57 }
 0x203   : > { %v4759_v15 = vpop.eup %4758 }
 0x204   : > { %v2209_v4 = vadd.f32 1.0, %v4759_v15 }
 0x205   : > { %v4761_v59 = vpop.eup %4760 }
 0x206   : > { %4766 = vrcp.f32 %v2209_v4  ;;  %v2211_v26 = vadd.f32 1.0, %v4761_v59  ;;  %v4763_v48 = vpop.eup %4762 }
 0x207   : > { %v4765_v42 = vpop.eup %4764  ;;  %v2210_v37 = vadd.f32 1.0, %v4763_v48 }
 0x208   : > { %4768 = vrcp.f32 %v2211_v26  ;;  %v2212_v22 = vadd.f32 1.0, %v4765_v42 }
 0x209   : > { %4770 = vrcp.f32 %v2210_v37 }
 0x20a   : > { %4772 = vrcp.f32 %v2212_v22 }
 0x210   : > { %v4767_v18 = vpop.eup %4766 }
 0x211   : > { %v2227_v1 = vmul.f32 %v4767_v18, %v2225_v7 }
 0x212   : > { %v4769_v4 = vpop.eup %4768 }
 0x213   : > { %v2229_v59 = vadd.f32 %v2227_v1, %v2193_v35  ;;  %v2228_v41 = vmul.f32 %v4769_v4, %v2225_v7  ;;  %v4771_v57 = vpop.eup %4770 }
 0x214   : > { %v4773_v15 = vpop.eup %4772  ;;  %v2233_v26 = vsub.f32 1.0, %v4771_v57 }
 0x215   : > { %4774 = vtanh.f32 %v2229_v59  ;;  %v2230_v13 = vadd.f32 %v2228_v41, %v2196_v31  ;;  %v2234_v48 = vsub.f32 1.0, %v4773_v15 }
 0x217   : > { %4776 = vtanh.f32 %v2230_v13 }
 0x21f   : > { %v4775_v27 = vpop.eup %4774 }
 0x220   : > { %v2235_v42 = vmul.f32 %v4775_v27, %v2233_v26 }
 0x221   : > { %v4777_v52 = vpop.eup %4776 }
 0x222   : > { %2237 = vst [vmem:[#allocation5] sm:$0xff] %v2235_v42  ;;  %v2236_v30 = vmul.f32 %v4777_v52, %v2234_v48 }
 0x224   : > { %2238 = vst [vmem:[#allocation5 + $0x8] sm:$0xff] %v2236_v30 }
 0x225 PF: > { %v5680_v37 = vpack.c.bf16 %v5529_v21, %v5523_v17  ;;  %v5684_v49 = vpack.c.bf16 %v5527_v20, %v5521_v16  ;;  %v5688_v7 = vpack.c.bf16 %v5542_v34, %v5535_v29  ;;  %v5694_v52 = vpack.c.bf16 %v5540_v33, %v5533_v28  ;;  %v6140_v27 = vld [vmem:[#allocation22_spill] sm:$0xff]  ;;  %v6141_v22 = vld [vmem:[#allocation23_spill] sm:$0xff]  ;;  %v2247_v1 = vld [vmem:[#allocation2 + $0x18] sm:$0xff]  ;;  %p3636_p8 = scmp.ne.s32.totalorder %s4904_s27, 1 }
 0x226   : > { %v5699_v17 = vpack.c.bf16 %v5556_v47, %v5549_v40  ;;  %v4919_v16 = vmov 0.0   ;;  %v5708_v20 = vpack.c.bf16 %v5554_v46, %v5547_v38  ;;  %v5714_v21 = vpack.c.bf16 %v5569_v25, %v5563_v51  ;;  %v6128_v25 = vld [vmem:[#allocation10_spill] sm:$0xff] }
 0x227   : > { %4085 = vmatprep.subr.bf16.mxu1 %v5680_v37  ;;  %4149 = vmatprep.subr.bf16.mxu0 %v5680_v37  ;;  %v5720_v28 = vpack.c.bf16 %v5567_v53, %v5561_v50  ;;  %v5726_v29 = vpack.c.bf16 %v5581_v58, %v5575_v56  ;;  %v5732_v33 = vpack.c.bf16 %v5579_v39, %v5573_v55  ;;  %v5778_v53 = vld [vmem:[#allocation4] sm:$0xff]  ;;  %v6129_v55 = vld [vmem:[#allocation11_spill] sm:$0xff]  ;;  %vm3337_vm4 = vcmask (!%p3636_p8), 261120  }
 0x228   : > { %4087 = vmatpush1.bf16.msra.mxu1 %v5684_v49  ;;  %2329 = vmatprep.mubr.f32.mxu1 %v4919_v16  ;;  %v5738_v34 = vpack.c.bf16 %v5593_v0, %v5587_v61  ;;  %v5744_v38 = vpack.c.bf16 %v5591_v63, %v5585_v60  ;;  %v5750_v40 = vpack.c.bf16 %v5605_v6, %v5599_v3  ;;  %v6131_v39 = vld [vmem:[#allocation13_spill] sm:$0xff]  ;;  %v6132_v60 = vld [vmem:[#allocation14_spill] sm:$0xff]  ;;  %v6133_v61 = vld [vmem:[#allocation15_spill] sm:$0xff]  ;;  %vm3353_vm5 = vcmask (!%p3636_p8), 7168  }
 0x229   : > { %4089 = vmatprep.subr.bf16.mxu1 %v5688_v7  ;;  %4151 = vmatpush1.bf16.msra.mxu0 %v5684_v49  ;;  %v5756_v46 = vpack.c.bf16 %v5603_v5, %v5597_v2  ;;  %v5762_v47 = vpack.c.bf16 %v5617_v12, %v5611_v9  ;;  %v5768_v50 = vpack.c.bf16 %v5615_v11, %v5609_v8  ;;  %v6134_v0 = vld [vmem:[#allocation16_spill] sm:$0xff]  ;;  %v6135_v2 = vld [vmem:[#allocation17_spill] sm:$0xff]  ;;  %v6136_v5 = vld [vmem:[#allocation18_spill] sm:$0xff] }
 0x22a   : > { %2555 = vmatprep.mubr.f32.mxu0 %v4919_v16  ;;  %4153 = vmatprep.subr.bf16.mxu0 %v5688_v7  ;;  %v5774_v51 = vpack.c.bf16 %v5531_v24, %v5525_v19  ;;  %v5784_v56 = vpack.c.bf16 %v6129_v55, %v6128_v25  ;;  %v5790_v19 = vld [vmem:[#allocation4 + $0x8] sm:$0xff]  ;;  %v6130_v24 = vld [vmem:[#allocation12_spill] sm:$0xff]  ;;  %v5804_v63 = vpack.c.bf16 %v6133_v61, %v6132_v60  ;;  %v6139_v11 = vld [vmem:[#allocation21_spill] sm:$0xff] }
 0x22b   : > { %v5795_v58 = vpack.c.bf16 %v6131_v39, %v6130_v24  ;;  %v5810_v3 = vpack.c.bf16 %v6135_v2, %v6134_v0  ;;  %v6137_v6 = vld [vmem:[#allocation19_spill] sm:$0xff]  ;;  %v6138_v9 = vld [vmem:[#allocation20_spill] sm:$0xff]  ;;  %v5828_v44 = vpack.c.bf16 %v6141_v22, %v6140_v27  ;;  %v2244_v45 = vld [vmem:[#allocation2] sm:$0xff] }
 0x22c   : > { %4091 = vmatpush1.bf16.msra.mxu1 %v5694_v52  ;;  %v5816_v8 = vpack.c.bf16 %v6137_v6, %v6136_v5  ;;  %v5822_v12 = vpack.c.bf16 %v6139_v11, %v6138_v9  ;;  %v2253_v35 = vld [vmem:[#allocation3 + $0x90] sm:$0xff]  ;;  %v2256_v31 = vld [vmem:[#allocation3 + $0xa8] sm:$0xff]  ;;  %v2248_v57 = vld [vmem:[#allocation2 + $0x20] sm:$0xff] }
 0x22d   : > { %4093 = vmatprep.subr.bf16.mxu1 %v5699_v17  ;;  %4155 = vmatpush1.bf16.msra.mxu0 %v5694_v52  ;;  %v2259_v18 = vadd.f32 %v2253_v35, %v2244_v45  ;;  %v2262_v13 = vadd.f32 %v2256_v31, %v2247_v1  ;;  %v2257_v15 = vld [vmem:[#allocation3 + $0xb0] sm:$0xff]  ;;  %v2245_v48 = vld [vmem:[#allocation2 + $0x8] sm:$0xff]  ;;  %v2254_v42 = vld [vmem:[#allocation3 + $0x98] sm:$0xff]  ;;  %v5853_v35 = vrot.slane %v5624_v14, %v5498_v23 }
 0x22e   : > { %4157 = vmatprep.subr.bf16.mxu0 %v5699_v17  ;;  %v2263_v24 = vadd.f32 %v2257_v15, %v2248_v57  ;;  %v2260_v39 = vadd.f32 %v2254_v42, %v2245_v48  ;;  %v2258_v1 = vld [vmem:[#allocation3 + $0xb8] sm:$0xff] }
 0x230   : > { %4095 = vmatpush1.bf16.msra.mxu1 %v5708_v20 }
 0x231   : > { %4097 = vmatprep.subr.bf16.mxu1 %v5714_v21  ;;  %4159 = vmatpush1.bf16.msra.mxu0 %v5708_v20 }
 0x232   : > { %4161 = vmatprep.subr.bf16.mxu0 %v5714_v21 }
 0x234   : > { %4099 = vmatpush1.bf16.msra.mxu1 %v5720_v28 }
 0x235   : > { %4101 = vmatprep.subr.bf16.mxu1 %v5726_v29  ;;  %4163 = vmatpush1.bf16.msra.mxu0 %v5720_v28 }
 0x236   : > { %4165 = vmatprep.subr.bf16.mxu0 %v5726_v29 }
 0x238   : > { %4103 = vmatpush1.bf16.msra.mxu1 %v5732_v33 }
 0x239   : > { %4105 = vmatprep.subr.bf16.mxu1 %v5738_v34  ;;  %4167 = vmatpush1.bf16.msra.mxu0 %v5732_v33 }
 0x23a   : > { %4169 = vmatprep.subr.bf16.mxu0 %v5738_v34 }
 0x23c   : > { %4107 = vmatpush1.bf16.msra.mxu1 %v5744_v38 }
 0x23d   : > { %4109 = vmatprep.subr.bf16.mxu1 %v5750_v40  ;;  %4171 = vmatpush1.bf16.msra.mxu0 %v5744_v38 }
 0x23e   : > { %4173 = vmatprep.subr.bf16.mxu0 %v5750_v40 }
 0x240   : > { %4111 = vmatpush1.bf16.msra.mxu1 %v5756_v46 }
 0x241   : > { %4113 = vmatprep.subr.bf16.mxu1 %v5762_v47  ;;  %4175 = vmatpush1.bf16.msra.mxu0 %v5756_v46 }
 0x242   : > { %4177 = vmatprep.subr.bf16.mxu0 %v5762_v47 }
 0x244   : > { %4115 = vmatpush1.bf16.msra.mxu1 %v5768_v50 }
 0x245   : > { %4117 = vmatprep.subr.bf16.mxu1 %v5774_v51  ;;  %4179 = vmatpush1.bf16.msra.mxu0 %v5768_v50 }
 0x246   : > { %4213 = vmatprep.subr.bf16.mxu0 %v5680_v37 }
 0x247   : > { %2330 = vmatmul.mubr.f32.vlgmr.msra.gmra.mrb[48].mxu1 %v5778_v53 }
 0x248   : > { %4119 = vmatpush3.bf16.msra.mxu1 %v5774_v51  ;;  %2335 = vmatprep.mubr.f32.mxu1 %v4919_v16 }
 0x249   : > { %4121 = vmatprep.subr.bf16.mxu1 %v5784_v56 }
 0x24b   : > { %2336 = vmatmul.mubr.f32.gmra.mrb[50].mxu1 %v5790_v19 }
 0x24c   : > { %4123 = vmatpush3.bf16.msra.mxu1 %v5784_v56  ;;  %3906 = vmatprep.mubr.f32.mxu1 %v5778_v53 }
 0x24d   : > { %4125 = vmatprep.subr.bf16.mxu1 %v5795_v58 }
 0x250   : > { %4127 = vmatpush3.bf16.msra.mxu1 %v5795_v58 }
 0x251   : > { %4129 = vmatprep.subr.bf16.mxu1 %v5804_v63 }
 0x254   : > { %4131 = vmatpush3.bf16.msra.mxu1 %v5804_v63 }
 0x255   : > { %4133 = vmatprep.subr.bf16.mxu1 %v5810_v3 }
 0x258   : > { %4135 = vmatpush3.bf16.msra.mxu1 %v5810_v3 }
 0x259   : > { %4137 = vmatprep.subr.bf16.mxu1 %v5816_v8 }
 0x25c   : > { %4139 = vmatpush3.bf16.msra.mxu1 %v5816_v8 }
 0x25d   : > { %4141 = vmatprep.subr.bf16.mxu1 %v5822_v12 }
 0x260   : > { %4143 = vmatpush3.bf16.msra.mxu1 %v5822_v12 }
 0x261   : > { %4145 = vmatprep.subr.bf16.mxu1 %v5828_v44 }
 0x264   : > { %4147 = vmatpush3.bf16.msra.mxu1 %v5828_v44 }
 0x265   : > { %4181 = vmatprep.subr.bf16.mxu1 %v5774_v51 }
 0x267   : > { %3907 = vmatmul.mubr.f32.vlgmr.msra.gmra.mrb[52].mxu1 %v5790_v19 }
 0x268   : > { %4183 = vmatpush3.bf16.msra.mxu1 %v5774_v51 }
 0x269   : > { %4185 = vmatprep.subr.bf16.mxu1 %v5784_v56 }
 0x26c   : > { %4187 = vmatpush3.bf16.msra.mxu1 %v5784_v56 }
 0x26d   : > { %4189 = vmatprep.subr.bf16.mxu1 %v5795_v58 }
 0x270   : > { %4191 = vmatpush3.bf16.msra.mxu1 %v5795_v58 }
 0x271   : > { %4193 = vmatprep.subr.bf16.mxu1 %v5804_v63 }
 0x274   : > { %4195 = vmatpush3.bf16.msra.mxu1 %v5804_v63 }
 0x275   : > { %4197 = vmatprep.subr.bf16.mxu1 %v5810_v3 }
 0x278   : > { %4199 = vmatpush3.bf16.msra.mxu1 %v5810_v3 }
 0x279   : > { %4201 = vmatprep.subr.bf16.mxu1 %v5816_v8 }
 0x27c   : > { %4203 = vmatpush3.bf16.msra.mxu1 %v5816_v8 }
 0x27d   : > { %4205 = vmatprep.subr.bf16.mxu1 %v5822_v12 }
 0x280   : > { %4207 = vmatpush3.bf16.msra.mxu1 %v5822_v12 }
 0x281   : > { %4209 = vmatprep.subr.bf16.mxu1 %v5828_v44 }
 0x284   : > { %4211 = vmatpush3.bf16.msra.mxu1 %v5828_v44 }
 0x285   : > { %4245 = vmatprep.subr.bf16.mxu1 %v5774_v51 }
 0x31a   : > { %v2331_v4 = vpop.f32.mrb[48].mxu1 }
 0x31b   : > { %v2417_v59 = vadd.f32 %v2331_v4, %v2259_v18  ;;  %v2333_v41 = vpop.f32.mrb[49].mxu1  ;;  %v2249_v18 = vld [vmem:[#allocation2 + $0x28] sm:$0xff]  ;;  %v2246_v4 = vld [vmem:[#allocation2 + $0x10] sm:$0xff] }
 0x31c   : > { %v2418_v0 = vadd.f32 %v2333_v41, %v2260_v39  ;;  %v2264_v15 = vadd.f32 %v2258_v1, %v2249_v18 }
 0x31d   : > { %v3620_v26 = vmul.f32 -1.442695, %v2417_v59  ;;  %v2255_v59 = vld [vmem:[#allocation3 + $0xa0] sm:$0xff] }
 0x31e   : > { %v2337_v30 = vpop.f32.mrb[50].mxu1  ;;  %v3621_v5 = vmul.f32 -1.442695, %v2418_v0  ;;  %v2261_v42 = vadd.f32 %v2255_v59, %v2246_v4 }
 0x31f   : > { %v2419_v25 = vadd.f32 %v2337_v30, %v2262_v13  ;;  %v2339_v55 = vpop.f32.mrb[51].mxu1  ;;  %4778 = vpow2.f32 %v3620_v26 }
 0x320   : > { %v2420_v61 = vadd.f32 %v2339_v55, %v2263_v24 }
 0x321   : > { %v3622_v60 = vmul.f32 -1.442695, %v2419_v25 }
 0x322   : > { %v3623_v2 = vmul.f32 -1.442695, %v2420_v61 }
 0x323   : > { %4780 = vpow2.f32 %v3622_v60 }
 0x324   : > { %4782 = vpow2.f32 %v3623_v2 }
 0x325   : > { %4784 = vpow2.f32 %v3621_v5 }
 0x329   : > { %v4779_v6 = vpop.eup %4778 }
 0x32a   : > { %v2433_v27 = vadd.f32 1.0, %v4779_v6 }
 0x32d   : > { %v4781_v9 = vpop.eup %4780 }
 0x32e   : > { %v2435_v11 = vadd.f32 1.0, %v4781_v9  ;;  %v4783_v22 = vpop.eup %4782 }
 0x32f   : > { %v4785_v45 = vpop.eup %4784  ;;  %v2436_v31 = vadd.f32 1.0, %v4783_v22 }
 0x330   : > { %4786 = vrcp.f32 %v2435_v11  ;;  %v2434_v13 = vadd.f32 1.0, %v4785_v45 }
 0x331   : > { %4788 = vrcp.f32 %v2433_v27 }
 0x332   : > { %4790 = vrcp.f32 %v2436_v31 }
 0x333   : > { %4792 = vrcp.f32 %v2434_v13 }
 0x33a   : > { %v4787_v41 = vpop.eup %4786  ;;  %v3908_v57 = vpop.f32.mrb[52].mxu1 }
 0x33b   : > { %v2452_v26 = vadd.f32 %v3908_v57, %v5853_v35  ;;  %v2408_v48 = vpop.f32.mrb[53].mxu1  ;;  %v4789_v25 = vpop.eup %4788 }
 0x33c   : > { %v2451_v30 = vadd.f32 %v5853_v35, %v2408_v48  ;;  %v4791_v39 = vpop.eup %4790 }
 0x33d   : > { %v2454_v55 = vmul.f32 %v4787_v41, %v2452_v26  ;;  %v4793_v60 = vpop.eup %4792  ;;  %v2460_v61 = vsub.f32 1.0, %v4791_v39  ;;  %v2464_v9 = vmul.f32 %v4791_v39, %v5790_v19 }
 0x33e   : > { %v2453_v23 = vmul.f32 %v4789_v25, %v2451_v30  ;;  %v2459_v2 = vsub.f32 1.0, %v4793_v60  ;;  %v2463_v27 = vmul.f32 %v4793_v60, %v5778_v53 }
 0x33f   : > { %v2456_v14 = vadd.f32 %v2454_v55, %v2264_v15 }
 0x340   : > { %v2455_v24 = vadd.f32 %v2453_v23, %v2261_v42  ;;  %v2481_v23 = vld [vmem:[#allocation3 + $0x70] sm:$0xff] }
 0x341   : > { %4794 = vtanh.f32 %v2456_v14 }
 0x342   : > { %4796 = vtanh.f32 %v2455_v24 }
 0x34b   : > { %v4795_v0 = vpop.eup %4794 }
 0x34c   : > { %v4797_v5 = vpop.eup %4796  ;;  %v2462_v6 = vmul.f32 %v4795_v0, %v2460_v61  ;;  %v2475_v61 = vld [vmem:[#allocation2 + $0x58] sm:$0xff]  ;;  %v2484_v0 = vld [vmem:[#allocation3 + $0x88] sm:$0xff] }
 0x34d   : > { %v2461_v11 = vmul.f32 %v4797_v5, %v2459_v2 }
 0x34e   : > { %v5859_v22 = vadd.f32 %v2464_v9, %v2462_v6  ;;  %v2490_v9 = vadd.f32 %v2484_v0, %v2475_v61 }
 0x34f   : > { %v5861_v45 = vadd.f32 %v2463_v27, %v2461_v11 }
 0x351   : > { %2556 = vmatmul.mubr.f32.vlgmr.msra.gmra.mrb[20].mxu0 %v5861_v45  ;;  %3941 = vmatprep.mubr.f32.mxu1 %v5861_v45 }
 0x352   : > { %3942 = vmatmul.mubr.f32.vlgmr.msra.gmra.mrb[54].mxu1 %v5859_v22  ;;  %2561 = vmatprep.mubr.f32.mxu0 %v4919_v16 }
 0x353   : > { %4215 = vmatpush1.bf16.msra.mxu0 %v5684_v49  ;;  %4247 = vmatpush3.bf16.msra.mxu1 %v5774_v51 }
 0x354   : > { %4217 = vmatprep.subr.bf16.mxu0 %v5688_v7  ;;  %4249 = vmatprep.subr.bf16.mxu1 %v5784_v56 }
 0x355   : > { %2562 = vmatmul.mubr.f32.gmra.mrb[22].mxu0 %v5859_v22 }
 0x356   : > { %2773 = vmatprep.mubr.f32.mxu0 %v4919_v16 }
 0x357   : > { %4219 = vmatpush1.bf16.msra.mxu0 %v5694_v52  ;;  %4251 = vmatpush3.bf16.msra.mxu1 %v5784_v56 }
 0x358   : > { %4221 = vmatprep.subr.bf16.mxu0 %v5699_v17  ;;  %4253 = vmatprep.subr.bf16.mxu1 %v5795_v58 }
 0x35b   : > { %4223 = vmatpush1.bf16.msra.mxu0 %v5708_v20  ;;  %4255 = vmatpush3.bf16.msra.mxu1 %v5795_v58 }
 0x35c   : > { %4225 = vmatprep.subr.bf16.mxu0 %v5714_v21  ;;  %4257 = vmatprep.subr.bf16.mxu1 %v5804_v63 }
 0x35f   : > { %4227 = vmatpush1.bf16.msra.mxu0 %v5720_v28  ;;  %4259 = vmatpush3.bf16.msra.mxu1 %v5804_v63 }
 0x360   : > { %4229 = vmatprep.subr.bf16.mxu0 %v5726_v29  ;;  %4261 = vmatprep.subr.bf16.mxu1 %v5810_v3 }
 0x363   : > { %4231 = vmatpush1.bf16.msra.mxu0 %v5732_v33  ;;  %4263 = vmatpush3.bf16.msra.mxu1 %v5810_v3 }
 0x364   : > { %4233 = vmatprep.subr.bf16.mxu0 %v5738_v34  ;;  %4265 = vmatprep.subr.bf16.mxu1 %v5816_v8 }
 0x367   : > { %4235 = vmatpush1.bf16.msra.mxu0 %v5744_v38  ;;  %4267 = vmatpush3.bf16.msra.mxu1 %v5816_v8 }
 0x368   : > { %4237 = vmatprep.subr.bf16.mxu0 %v5750_v40  ;;  %4269 = vmatprep.subr.bf16.mxu1 %v5822_v12 }
 0x36b   : > { %4239 = vmatpush1.bf16.msra.mxu0 %v5756_v46  ;;  %4271 = vmatpush3.bf16.msra.mxu1 %v5822_v12 }
 0x36c   : > { %4241 = vmatprep.subr.bf16.mxu0 %v5762_v47  ;;  %4273 = vmatprep.subr.bf16.mxu1 %v5828_v44 }
 0x36f   : > { %4243 = vmatpush1.bf16.msra.mxu0 %v5768_v50  ;;  %4275 = vmatpush3.bf16.msra.mxu1 %v5828_v44 }
 0x370   : > { %4277 = vmatprep.subr.bf16.mxu0 %v5680_v37  ;;  %4309 = vmatprep.subr.bf16.mxu1 %v5774_v51 }
 0x424   : > { %v2557_v53 = vpop.f32.mrb[20].mxu0 }
 0x425   : > { %v2643_v19 = vadd.f32 %v5659_v32, %v2557_v53  ;;  %v2559_v18 = vpop.f32.mrb[21].mxu0  ;;  %v3943_v1 = vpop.f32.mrb[54].mxu1 }
 0x426   : > { %v2634_v31 = vpop.f32.mrb[55].mxu1  ;;  %v2644_v59 = vadd.f32 %v5662_v43, %v2559_v18  ;;  %v2472_v43 = vld [vmem:[#allocation2 + $0x40] sm:$0xff]  ;;  %v2672_v5 = vadd.f32 %v3943_v1, %v5853_v35 }
 0x427   : > { %v3624_v4 = vmul.f32 -1.442695, %v2643_v19  ;;  %v2487_v24 = vadd.f32 %v2481_v23, %v2472_v43  ;;  %v2671_v39 = vadd.f32 %v2634_v31, %v5853_v35 }
 0x428   : > { %v2563_v41 = vpop.f32.mrb[22].mxu0  ;;  %v3625_v37 = vmul.f32 -1.442695, %v2644_v59 }
 0x429   : > { %4798 = vpow2.f32 %v3624_v4  ;;  %v2645_v13 = vadd.f32 %v5665_v10, %v2563_v41  ;;  %v2565_v57 = vpop.f32.mrb[23].mxu0 }
 0x42a   : > { %v2646_v26 = vadd.f32 %v5668_v62, %v2565_v57 }
 0x42b   : > { %v3626_v15 = vmul.f32 -1.442695, %v2645_v13 }
 0x42c   : > { %v3627_v48 = vmul.f32 -1.442695, %v2646_v26 }
 0x42d   : > { %4800 = vpow2.f32 %v3626_v15 }
 0x42e   : > { %4802 = vpow2.f32 %v3625_v37 }
 0x42f   : > { %4804 = vpow2.f32 %v3627_v48 }
 0x433   : > { %v4799_v42 = vpop.eup %4798 }
 0x434   : > { %v2659_v32 = vadd.f32 1.0, %v4799_v42  ;;  %v2694_v42 = vld [vmem:[#allocation2 + $0x88] sm:$0xff] }
 0x436   : > { %4806 = vrcp.f32 %v2659_v32  ;;  %v2702_v32 = vld [vmem:[#allocation3 + $0x58] sm:$0xff] }
 0x437   : > { %v4801_v30 = vpop.eup %4800 }
 0x438   : > { %v2661_v25 = vadd.f32 1.0, %v4801_v30  ;;  %v4803_v55 = vpop.eup %4802 }
 0x439   : > { %v4805_v14 = vpop.eup %4804  ;;  %v2660_v10 = vadd.f32 1.0, %v4803_v55  ;;  %v2708_v55 = vadd.f32 %v2702_v32, %v2694_v42 }
 0x43a   : > { %4808 = vrcp.f32 %v2661_v25  ;;  %v2662_v60 = vadd.f32 1.0, %v4805_v14 }
 0x43b   : > { %4810 = vrcp.f32 %v2660_v10 }
 0x43c   : > { %4812 = vrcp.f32 %v2662_v60 }
 0x440   : > { %v4807_v62 = vpop.eup %4806 }
 0x441   : > { %v2673_v2 = vmul.f32 %v4807_v62, %v2671_v39 }
 0x443   : > { %v2675_v6 = vadd.f32 %v2673_v2, %v2487_v24 }
 0x444   : > { %v4809_v11 = vpop.eup %4808 }
 0x445   : > { %4814 = vtanh.f32 %v2675_v6  ;;  %v2674_v27 = vmul.f32 %v4809_v11, %v2672_v5  ;;  %v4811_v19 = vpop.eup %4810 }
 0x446   : > { %v4813_v18 = vpop.eup %4812  ;;  %v2679_v4 = vsub.f32 1.0, %v4811_v19  ;;  %v2683_v41 = vmul.f32 %v4811_v19, %v5861_v45 }
 0x447   : > { %v2676_v53 = vadd.f32 %v2674_v27, %v2490_v9  ;;  %v2680_v57 = vsub.f32 1.0, %v4813_v18  ;;  %v2684_v26 = vmul.f32 %v4813_v18, %v5859_v22  ;;  %v6144_v18 = vld [vmem:[#allocation24_spill] sm:$0xff] }
 0x449   : > { %4816 = vtanh.f32 %v2676_v53 }
 0x44f   : > { %v4815_v31 = vpop.eup %4814 }
 0x450   : > { %v2681_v59 = vmul.f32 %v4815_v31, %v2679_v4 }
 0x452   : > { %v5908_v13 = vadd.f32 %v2683_v41, %v2681_v59  ;;  %v6145_v41 = vld [vmem:[#allocation25_spill] sm:$0xff] }
 0x453   : > { %v4817_v15 = vpop.eup %4816 }
 0x454   : > { %2774 = vmatmul.mubr.f32.vlgmr.msra.gmra.mrb[24].mxu0 %v5908_v13  ;;  %3976 = vmatprep.mubr.f32.mxu1 %v5908_v13  ;;  %v2682_v1 = vmul.f32 %v4817_v15, %v2680_v57 }
 0x455   : > { %2779 = vmatprep.mubr.f32.mxu0 %v4919_v16  ;;  %4279 = vmatpush1.bf16.msra.mxu0 %v5684_v49 }
 0x456   : > { %v5915_v37 = vadd.f32 %v2684_v26, %v2682_v1  ;;  %4281 = vmatprep.subr.bf16.mxu0 %v5688_v7  ;;  %v6146_v1 = vld [vmem:[#allocation26_spill] sm:$0xff] }
 0x458   : > { %2780 = vmatmul.mubr.f32.gmra.mrb[26].mxu0 %v5915_v37  ;;  %3977 = vmatmul.mubr.f32.vlgmr.msra.gmra.mrb[56].mxu1 %v5915_v37 }
 0x459   : > { %4283 = vmatpush1.bf16.msra.mxu0 %v5694_v52  ;;  %4311 = vmatpush3.bf16.msra.mxu1 %v5774_v51 }
 0x45a   : > { %4285 = vmatprep.subr.bf16.mxu0 %v5699_v17  ;;  %4313 = vmatprep.subr.bf16.mxu1 %v5784_v56 }
 0x45b   : > { %2991 = vmatprep.mubr.f32.mxu0 %v4919_v16 }
 0x45d   : > { %4287 = vmatpush1.bf16.msra.mxu0 %v5708_v20  ;;  %4315 = vmatpush3.bf16.msra.mxu1 %v5784_v56 }
 0x45e   : > { %4289 = vmatprep.subr.bf16.mxu0 %v5714_v21  ;;  %4317 = vmatprep.subr.bf16.mxu1 %v5795_v58 }
 0x461   : > { %4291 = vmatpush1.bf16.msra.mxu0 %v5720_v28  ;;  %4319 = vmatpush3.bf16.msra.mxu1 %v5795_v58 }
 0x462   : > { %4293 = vmatprep.subr.bf16.mxu0 %v5726_v29  ;;  %4321 = vmatprep.subr.bf16.mxu1 %v5804_v63  ;;  %v6142_v29 = vld [vmem:[#allocation28_spill] sm:$0xff] }
 0x465   : > { %4295 = vmatpush1.bf16.msra.mxu0 %v5732_v33  ;;  %4323 = vmatpush3.bf16.msra.mxu1 %v5804_v63 }
 0x466   : > { %4297 = vmatprep.subr.bf16.mxu0 %v5738_v34  ;;  %4325 = vmatprep.subr.bf16.mxu1 %v5810_v3 }
 0x469   : > { %4299 = vmatpush1.bf16.msra.mxu0 %v5744_v38  ;;  %4327 = vmatpush3.bf16.msra.mxu1 %v5810_v3  ;;  %v2691_v3 = vld [vmem:[#allocation2 + $0x70] sm:$0xff] }
 0x46a   : > { %4301 = vmatprep.subr.bf16.mxu0 %v5750_v40  ;;  %4329 = vmatprep.subr.bf16.mxu1 %v5816_v8 }
 0x46d   : > { %4303 = vmatpush1.bf16.msra.mxu0 %v5756_v46  ;;  %4331 = vmatpush3.bf16.msra.mxu1 %v5816_v8  ;;  %v6143_v46 = vld [vmem:[#allocation29_spill] sm:$0xff] }
 0x46e   : > { %4305 = vmatprep.subr.bf16.mxu0 %v5762_v47  ;;  %4333 = vmatprep.subr.bf16.mxu1 %v5822_v12  ;;  %v2699_v8 = vld [vmem:[#allocation3 + $0x40] sm:$0xff] }
 0x46f   : > { %v2705_v22 = vadd.f32 %v2699_v8, %v2691_v3 }
 0x471   : > { %4307 = vmatpush1.bf16.msra.mxu0 %v5768_v50  ;;  %4335 = vmatpush3.bf16.msra.mxu1 %v5822_v12 }
 0x472   : > { %4337 = vmatprep.subr.bf16.mxu1 %v5828_v44 }
 0x475   : > { %4339 = vmatpush3.bf16.msra.mxu1 %v5828_v44 }
 0x527   : > { %v2775_v49 = vpop.f32.mrb[24].mxu0 }
 0x528   : > { %v2861_v7 = vadd.f32 %v5647_v36, %v2775_v49  ;;  %v2777_v52 = vpop.f32.mrb[25].mxu0 }
 0x529   : > { %v2862_v20 = vadd.f32 %v5650_v54, %v2777_v52  ;;  %v6147_v52 = vld [vmem:[#allocation27_spill] sm:$0xff] }
 0x52a   : > { %v3628_v17 = vmul.f32 -1.442695, %v2861_v7 }
 0x52b   : > { %v2781_v21 = vpop.f32.mrb[26].mxu0  ;;  %v3978_v28 = vpop.f32.mrb[56].mxu1  ;;  %v3629_v50 = vmul.f32 -1.442695, %v2862_v20 }
 0x52c   : > { %4818 = vpow2.f32 %v3628_v17  ;;  %v2863_v33 = vadd.f32 %v6142_v29, %v2781_v21  ;;  %v2783_v34 = vpop.f32.mrb[27].mxu0  ;;  %v2852_v38 = vpop.f32.mrb[57].mxu1  ;;  %v2890_v43 = vadd.f32 %v3978_v28, %v5853_v35 }
 0x52d   : > { %v2864_v47 = vadd.f32 %v6143_v46, %v2783_v34  ;;  %v2889_v45 = vadd.f32 %v2852_v38, %v5853_v35  ;;  %v2909_v38 = vld [vmem:[#allocation2 + $0xa0] sm:$0xff] }
 0x52e   : > { %v3630_v40 = vmul.f32 -1.442695, %v2863_v33 }
 0x52f   : > { %v3631_v51 = vmul.f32 -1.442695, %v2864_v47 }
 0x530   : > { %4820 = vpow2.f32 %v3630_v40  ;;  %v2917_v40 = vld [vmem:[#allocation3 + $0x10] sm:$0xff] }
 0x531   : > { %4822 = vpow2.f32 %v3629_v50  ;;  %v2923_v50 = vadd.f32 %v2917_v40, %v2909_v38 }
 0x532   : > { %4824 = vpow2.f32 %v3631_v51 }
 0x536   : > { %v4819_v56 = vpop.eup %4818 }
 0x537   : > { %v2877_v36 = vadd.f32 1.0, %v4819_v56 }
 0x539   : > { %4826 = vrcp.f32 %v2877_v36  ;;  %v2912_v36 = vld [vmem:[#allocation2 + $0xb8] sm:$0xff] }
 0x53a   : > { %v4821_v58 = vpop.eup %4820 }
 0x53b   : > { %v2879_v54 = vadd.f32 1.0, %v4821_v58  ;;  %v4823_v63 = vpop.eup %4822  ;;  %v2920_v58 = vld [vmem:[#allocation3 + $0x28] sm:$0xff] }
 0x53c   : > { %v4825_v12 = vpop.eup %4824  ;;  %v2878_v44 = vadd.f32 1.0, %v4823_v63  ;;  %v2926_v3 = vadd.f32 %v2920_v58, %v2912_v36  ;;  %v3161_v58 = vld [vmem:[%s6095_s9 + $0x70] sm:$0xff] (!%p3636_p8) }
 0x53d   : > { %4828 = vrcp.f32 %v2879_v54  ;;  %v2880_v30 = vadd.f32 1.0, %v4825_v12 }
 0x53e   : > { %4830 = vrcp.f32 %v2878_v44 }
 0x53f   : > { %4832 = vrcp.f32 %v2880_v30 }
 0x543   : > { %v4827_v48 = vpop.eup %4826 }
 0x544   : > { %v2891_v25 = vmul.f32 %v4827_v48, %v2889_v45 }
 0x546   : > { %v2893_v23 = vadd.f32 %v2891_v25, %v2705_v22 }
 0x547   : > { %v4829_v14 = vpop.eup %4828 }
 0x548   : > { %v2892_v10 = vmul.f32 %v4829_v14, %v2890_v43  ;;  %4834 = vtanh.f32 %v2893_v23  ;;  %v4831_v39 = vpop.eup %4830 }
 0x549   : > { %v4833_v62 = vpop.eup %4832  ;;  %v2897_v60 = vsub.f32 1.0, %v4831_v39  ;;  %v2901_v2 = vmul.f32 %v4831_v39, %v5908_v13  ;;  %v3147_v39 = vld [vmem:[%s6095_s9] sm:$0xff] (!%p3636_p8) }
 0x54a   : > { %v2894_v24 = vadd.f32 %v2892_v10, %v2708_v55  ;;  %v2898_v6 = vsub.f32 1.0, %v4833_v62  ;;  %v2902_v27 = vmul.f32 %v4833_v62, %v5915_v37  ;;  %v3148_v62 = vld [vmem:[%s6095_s9 + $0x8] sm:$0xff] (!%p3636_p8) }
 0x54c   : > { %4836 = vtanh.f32 %v2894_v24 }
 0x552   : > { %v4835_v61 = vpop.eup %4834 }
 0x553   : > { %v2899_v0 = vmul.f32 %v4835_v61, %v2897_v60  ;;  %v3131_v60 = vld [vmem:[%s6094_s8] sm:$0xff] (!%p3636_p8)  ;;  %v4340_v61 = vpack.c.bf16 (!%p3636_p8), %v3148_v62, %v3147_v39 }
 0x555   : > { %v2903_v5 = vadd.f32 %v2901_v2, %v2899_v0  ;;  %v3132_v0 = vld [vmem:[%s6094_s8 + $0x8] sm:$0xff] (!%p3636_p8)  ;;  %v3149_v2 = vld [vmem:[%s6095_s9 + $0x10] sm:$0xff] (!%p3636_p8)  ;;  %4341 = vmatprep.subr.bf16.mxu1 (!%p3636_p8), %v4340_v61 }
 0x556   : > { %v4837_v9 = vpop.eup %4836 }
 0x557   : > { %2992 = vmatmul.mubr.f32.vlgmr.msra.gmra.mrb[28].mxu0 %v2903_v5  ;;  %4011 = vmatprep.mubr.f32.mxu1 %v2903_v5  ;;  %v2900_v11 = vmul.f32 %v4837_v9, %v2898_v6  ;;  %v4372_v6 = vpack.c.bf16 (!%p3636_p8), %v3132_v0, %v3131_v60  ;;  %v3639_v0 = vld [vmem:[#allocation6] ss:$0 sm:$0xff] (!%p3636_p8) }
 0x558   : > { %2997 = vmatprep.mubr.f32.mxu0 %v4919_v16 }
 0x559   : > { %v2904_v53 = vadd.f32 %v2902_v27, %v2900_v11  ;;  %v3133_v11 = vld [vmem:[%s6094_s8 + $0x10] sm:$0xff] (!%p3636_p8)  ;;  %v3134_v27 = vld [vmem:[%s6094_s8 + $0x18] sm:$0xff] (!%p3636_p8)  ;;  %4373 = vmatprep.subr.bf16.mxu0 (!%p3636_p8), %v4372_v6 }
 0x55a   : > { %4375 = vmatpush3.bf16.msra.mxu0 (!%p3636_p8), %v4372_v6 }
 0x55b   : > { %2998 = vmatmul.mubr.f32.gmra.mrb[30].mxu0 %v2904_v53  ;;  %4012 = vmatmul.mubr.f32.vlgmr.msra.gmra.mrb[58].mxu1 %v2904_v53 }
 0x55c   : > { %4343 = vmatpush3.bf16.msra.mxu1 (!%p3636_p8), %v4340_v61 }
 0x62a   : > { %v2993_v19 = vpop.f32.mrb[28].mxu0 }
 0x62b   : > { %v3079_v4 = vadd.f32 %v6144_v18, %v2993_v19  ;;  %v2995_v31 = vpop.f32.mrb[29].mxu0  ;;  %v4376_v19 = vpack.c.bf16 (!%p3636_p8), %v3134_v27, %v3133_v11  ;;  %v3152_v18 = vld [vmem:[%s6095_s9 + $0x28] sm:$0xff] (!%p3636_p8) }
 0x62c   : > { %v3080_v13 = vadd.f32 %v6145_v41, %v2995_v31  ;;  %v3136_v31 = vld [vmem:[%s6094_s8 + $0x28] sm:$0xff] (!%p3636_p8) }
 0x62d   : > { %v3632_v59 = vmul.f32 -1.442695, %v3079_v4  ;;  %v3135_v4 = vld [vmem:[%s6094_s8 + $0x20] sm:$0xff] (!%p3636_p8)  ;;  %4377 = vmatprep.subr.bf16.mxu0 (!%p3636_p8), %v4376_v19 }
 0x62e   : > { %v2999_v57 = vpop.f32.mrb[30].mxu0  ;;  %v4013_v15 = vpop.f32.mrb[58].mxu1  ;;  %v3633_v17 = vmul.f32 -1.442695, %v3080_v13  ;;  %v4380_v41 = vpack.c.bf16 (!%p3636_p8), %v3136_v31, %v3135_v4  ;;  %v3153_v13 = vld [vmem:[%s6095_s9 + $0x30] sm:$0xff] (!%p3636_p8)  ;;  %4379 = vmatpush3.bf16.msra.mxu0 (!%p3636_p8), %v4376_v19 }
 0x62f   : > { %4838 = vpow2.f32 %v3632_v59  ;;  %v3081_v26 = vadd.f32 %v6146_v1, %v2999_v57  ;;  %v3001_v49 = vpop.f32.mrb[31].mxu0  ;;  %v3070_v7 = vpop.f32.mrb[59].mxu1  ;;  %v3108_v8 = vadd.f32 %v4013_v15, %v5853_v35  ;;  %v3154_v57 = vld [vmem:[%s6095_s9 + $0x38] sm:$0xff] (!%p3636_p8)  ;;  %v3137_v15 = vld [vmem:[%s6094_s8 + $0x30] sm:$0xff] (!%p3636_p8) }
 0x630   : > { %v3082_v16 = vadd.f32 %v6147_v52, %v3001_v49  ;;  %v3107_v51 = vadd.f32 %v3070_v7, %v5853_v35  ;;  %v3138_v1 = vld [vmem:[%s6094_s8 + $0x38] sm:$0xff] (!%p3636_p8)  ;;  %4381 = vmatprep.subr.bf16.mxu0 (!%p3636_p8), %v4380_v41  ;;  %v3155_v7 = vld [vmem:[%s6095_s9 + $0x40] sm:$0xff] (!%p3636_p8)  ;;  %v3129_v52 = vld [vmem:[#allocation5] sm:$0xff] (!%p3636_p8) }
 0x631   : > { %v3634_v37 = vmul.f32 -1.442695, %v3081_v26  ;;  %v4352_v26 = vpack.c.bf16 (!%p3636_p8), %v3154_v57, %v3153_v13  ;;  %v4384_v49 = vpack.c.bf16 (!%p3636_p8), %v3138_v1, %v3137_v15  ;;  %4081 = vmatprep.mubr.f32.mxu0 (!%p3636_p8), %v3129_v52 }
 0x632   : > { %v3635_v20 = vmul.f32 -1.442695, %v3082_v16  ;;  %v3139_v16 = vld [vmem:[%s6094_s8 + $0x40] sm:$0xff] (!%p3636_p8)  ;;  %4383 = vmatpush3.bf16.msra.mxu0 (!%p3636_p8), %v4380_v41 }
 0x633   : > { %4840 = vpow2.f32 %v3634_v37  ;;  %v3156_v37 = vld [vmem:[%s6095_s9 + $0x48] sm:$0xff] (!%p3636_p8)  ;;  %4385 = vmatprep.subr.bf16.mxu0 (!%p3636_p8), %v4384_v49 }
 0x634   : > { %4842 = vpow2.f32 %v3633_v17  ;;  %v3140_v17 = vld [vmem:[%s6094_s8 + $0x48] sm:$0xff] (!%p3636_p8) }
 0x635   : > { %4844 = vpow2.f32 %v3635_v20  ;;  %v4356_v20 = vpack.c.bf16 (!%p3636_p8), %v3156_v37, %v3155_v7 }
 0x636   : > { %4387 = vmatpush3.bf16.msra.mxu0 (!%p3636_p8), %v4384_v49 }
 0x639   : > { %v4839_v21 = vpop.eup %4838 }
 0x63a   : > { %v3095_v28 = vadd.f32 1.0, %v4839_v21  ;;  %v4388_v21 = vpack.c.bf16 (!%p3636_p8), %v3140_v17, %v3139_v16 }
 0x63c   : > { %4846 = vrcp.f32 %v3095_v28  ;;  %v3157_v28 = vld [vmem:[%s6095_s9 + $0x50] sm:$0xff] (!%p3636_p8)  ;;  %4389 = vmatprep.subr.bf16.mxu0 (!%p3636_p8), %v4388_v21 }
 0x63d   : > { %v4841_v29 = vpop.eup %4840  ;;  %4391 = vmatpush3.bf16.msra.mxu0 (!%p3636_p8), %v4388_v21 }
 0x63e   : > { %v3097_v33 = vadd.f32 1.0, %v4841_v29  ;;  %v4843_v34 = vpop.eup %4842  ;;  %v3158_v29 = vld [vmem:[%s6095_s9 + $0x58] sm:$0xff] (!%p3636_p8) }
 0x63f   : > { %v4845_v46 = vpop.eup %4844  ;;  %v3096_v47 = vadd.f32 1.0, %v4843_v34  ;;  %v3142_v34 = vld [vmem:[%s6094_s8 + $0x58] sm:$0xff] (!%p3636_p8)  ;;  %v4360_v38 = vpack.c.bf16 (!%p3636_p8), %v3158_v29, %v3157_v28 }
 0x640   : > { %4848 = vrcp.f32 %v3097_v33  ;;  %v3098_v54 = vadd.f32 1.0, %v4845_v46  ;;  %v3141_v33 = vld [vmem:[%s6094_s8 + $0x50] sm:$0xff] (!%p3636_p8)  ;;  %v3159_v46 = vld [vmem:[%s6095_s9 + $0x60] sm:$0xff] (!%p3636_p8) }
 0x641   : > { %4850 = vrcp.f32 %v3096_v47  ;;  %v4392_v40 = vpack.c.bf16 (!%p3636_p8), %v3142_v34, %v3141_v33  ;;  %v3160_v47 = vld [vmem:[%s6095_s9 + $0x68] sm:$0xff] (!%p3636_p8) }
 0x642   : > { %4852 = vrcp.f32 %v3098_v54  ;;  %v3162_v54 = vld [vmem:[%s6095_s9 + $0x78] sm:$0xff] (!%p3636_p8) }
 0x643   : > { %4393 = vmatprep.subr.bf16.mxu0 (!%p3636_p8), %v4392_v40 }
 0x644   : > { %4395 = vmatpush3.bf16.msra.mxu0 (!%p3636_p8), %v4392_v40 }
 0x646   : > { %v4847_v56 = vpop.eup %4846 }
 0x647   : > { %v3109_v63 = vmul.f32 %v4847_v56, %v3107_v51  ;;  %v3144_v51 = vld [vmem:[%s6094_s8 + $0x68] sm:$0xff] (!%p3636_p8)  ;;  %v4364_v56 = vpack.c.bf16 (!%p3636_p8), %v3160_v47, %v3159_v46 }
 0x649   : > { %v3111_v12 = vadd.f32 %v3109_v63, %v2923_v50  ;;  %v3143_v50 = vld [vmem:[%s6094_s8 + $0x60] sm:$0xff] (!%p3636_p8)  ;;  %v3145_v63 = vld [vmem:[%s6094_s8 + $0x70] sm:$0xff] (!%p3636_p8) }
 0x64a   : > { %v4849_v44 = vpop.eup %4848  ;;  %v4396_v36 = vpack.c.bf16 (!%p3636_p8), %v3144_v51, %v3143_v50 }
 0x64b   : > { %v3110_v22 = vmul.f32 %v4849_v44, %v3108_v8  ;;  %4854 = vtanh.f32 %v3111_v12  ;;  %v4851_v48 = vpop.eup %4850  ;;  %v4368_v8 = vpack.c.bf16 (!%p3636_p8), %v3162_v54, %v3161_v58  ;;  %v3130_v44 = vld [vmem:[#allocation5 + $0x8] sm:$0xff] (!%p3636_p8) }
 0x64c   : > { %v4853_v42 = vpop.eup %4852  ;;  %v3115_v32 = vsub.f32 1.0, %v4851_v48  ;;  %v3119_v25 = vmul.f32 %v4851_v48, %v2903_v5  ;;  %v3150_v5 = vld [vmem:[%s6095_s9 + $0x18] sm:$0xff] (!%p3636_p8)  ;;  %4397 = vmatprep.subr.bf16.mxu0 (!%p3636_p8), %v4396_v36  ;;  %v3637_v48 = vld [vmem:[%s6096_s10] ss:$0 sm:$0xff] (!%p3636_p8) }
 0x64d   : > { %v3112_v45 = vadd.f32 %v3110_v22, %v2926_v3  ;;  %v3116_v43 = vsub.f32 1.0, %v4853_v42  ;;  %v3120_v24 = vmul.f32 %v4853_v42, %v2904_v53  ;;  %v4344_v9 = vpack.c.bf16 (!%p3636_p8), %v3150_v5, %v3149_v2  ;;  %v3151_v53 = vld [vmem:[%s6095_s9 + $0x20] sm:$0xff] (!%p3636_p8)  ;;  %v3146_v3 = vld [vmem:[%s6094_s8 + $0x78] sm:$0xff] (!%p3636_p8)  ;;  %4399 = vmatpush3.bf16.msra.mxu0 (!%p3636_p8), %v4396_v36 }
 0x64e   : > { %v4348_v59 = vpack.c.bf16 (!%p3636_p8), %v3152_v18, %v3151_v53  ;;  %v4400_v12 = vpack.c.bf16 (!%p3636_p8), %v3146_v3, %v3145_v63 }
 0x64f   : > { %4856 = vtanh.f32 %v3112_v45  ;;  %4345 = vmatprep.subr.bf16.mxu1 (!%p3636_p8), %v4344_v9 }
 0x650   : > { %4347 = vmatpush3.bf16.msra.mxu1 (!%p3636_p8), %v4344_v9  ;;  %4401 = vmatprep.subr.bf16.mxu0 (!%p3636_p8), %v4400_v12 }
 0x651   : > { %4349 = vmatprep.subr.bf16.mxu1 (!%p3636_p8), %v4348_v59  ;;  %4403 = vmatpush3.bf16.msra.mxu0 (!%p3636_p8), %v4400_v12 }
 0x654   : > { %4351 = vmatpush3.bf16.msra.mxu1 (!%p3636_p8), %v4348_v59  ;;  %4082 = vmatmul.mubr.f32.vlgmr.msra.gmra.mrb[0].mxu0 (!%p3636_p8), %v3130_v44 }
 0x655   : > { %v4855_v30 = vpop.eup %4854  ;;  %4353 = vmatprep.subr.bf16.mxu1 (!%p3636_p8), %v4352_v26 }
 0x656   : > { %v3117_v55 = vmul.f32 %v4855_v30, %v3115_v32 }
 0x658   : > { %v3121_v23 = vadd.f32 %v3119_v25, %v3117_v55  ;;  %3128 = sbr.rel (%p3636_p8) target bundleno = 2015 (0x7df), region = 88  ;;  %4355 = vmatpush3.bf16.msra.mxu1 (!%p3636_p8), %v4352_v26 }
 0x659   : > { %v4857_v14 = vpop.eup %4856  ;;  %4357 = vmatprep.subr.bf16.mxu1 (!%p3636_p8), %v4356_v20 }
 0x65a   : > { %v3118_v10 = vmul.f32 %v4857_v14, %v3116_v43  ;;  %3123 = vst [vmem:[#allocation4] sm:$0xff] %v3121_v23  ;;  %4046 = vmatprep.mubr.f32.mxu1 (!%p3636_p8), %v3121_v23 }
 0x65c   : > { %v5964_v35 = vadd.f32 %v3120_v24, %v3118_v10  ;;  %4359 = vmatpush3.bf16.msra.mxu1 (!%p3636_p8), %v4356_v20  ;;  %v3638_v10 = vld [vmem:[%s6097_s11] ss:$0 sm:$0xff] (!%p3636_p8) }
 0x65d   : > { %4361 = vmatprep.subr.bf16.mxu1 (!%p3636_p8), %v4360_v38 }
 0x65e   : > { %3124 = vst [vmem:[#allocation4 + $0x8] sm:$0xff] %v5964_v35 }
 0x660   : > { %4363 = vmatpush3.bf16.msra.mxu1 %v4360_v38 }
 0x661   : > { %4365 = vmatprep.subr.bf16.mxu1 %v4364_v56 }
 0x664   : > { %4367 = vmatpush3.bf16.msra.mxu1 %v4364_v56 }
 0x665   : > { %4369 = vmatprep.subr.bf16.mxu1 %v4368_v8 }
 0x668   : > { %4371 = vmatpush3.bf16.msra.mxu1 %v4368_v8 }
 0x66b   : > { %4047 = vmatmul.mubr.f32.vlgmr.msra.gmra.mrb[0].mxu1 %v5964_v35 }
 0x727   : > { %v4083_v45 = vpop.f32.mrb[0].mxu0 }
 0x728   : > { %v3304_v30 = vpop.f32.mrb[1].mxu0 }
 0x73e   : > { %v4048_v22 = vpop.f32.mrb[0].mxu1 }
 0x73f   : > { %v3229_v42 = vpop.f32.mrb[1].mxu1  ;;  %v3310_v32 = vadd.f32 %v4083_v45, %v4048_v22 }
 0x740   : > { %v3305_v25 = vadd.f32 %v3304_v30, %v3229_v42 }
 0x741   : > { %v3321_v55 = vadd.f32 %v3637_v48, %v3310_v32 }
 0x742   : > { %v3320_v43 = vadd.f32 %v3637_v48, %v3305_v25 }
 0x743   : > { %v3325_v23 = vmul.f32 0.01, %v3321_v55  ;;  %vm3323_vm2 = vcmp.ge.f32.partialorder %v3321_v55, 0.0 }
 0x744   : > { %v3324_v14 = vmul.f32 0.01, %v3320_v43  ;;  %vm3322_vm3 = vcmp.ge.f32.partialorder %v3320_v43, 0.0 }
 0x745   : > { %v3327_v35 = vsel %vm3323_vm2, %v3321_v55, %v3325_v23 }
 0x746   : > { %v3326_v24 = vsel %vm3322_vm3, %v3320_v43, %v3324_v14  ;;  %v3336_v60 = vmul.f32 %v3638_v10, %v3327_v35 }
 0x747   : > { %v3335_v39 = vmul.f32 %v3638_v10, %v3326_v24 }
 0x748   : > { %v3341_v61 = vsel %vm3337_vm4, %v3336_v60, 0.0 }
 0x749   : > { %v3338_v62 = vsel %vm3337_vm4, %v3335_v39, 0.0 }
 0x74a   : > { %3339 = vadd.xlane.f32.xlu0 %v3338_v62 }
 0x74e   : > { %3342 = vadd.xlane.f32.xlu0 %v3341_v61 }
 0x7d7   : > { %v3340_v2 = vpop.xlane.xlu0 %3339 }
 0x7d8   : > { %v3351_v5 = vadd.f32 %v3639_v0, %v3340_v2 }
 0x7da   : > { %3354 = vst.msk [vmem:[%s6099_s13] sm:$0xff] %vm3353_vm5, %v3351_v5 }
 0x7db   : > { %v3343_v6 = vpop.xlane.xlu0 %3342 }
 0x7dc   : > { %v3352_v9 = vadd.f32 %v3639_v0, %v3343_v6 }
 0x7de   : > { %3355 = vst.msk [vmem:[%s6099_s13 + $0x8] sm:$0xff] %vm3353_vm5, %v3352_v9 }
 0x7df PF: > { %s26_s29 = sadd.s32 1, %s4912_s29   ;;  %s6148_s27 = smov %s4908_s28 }
 0x7e0   : > { %p23_p10 = scmp.ge.s32.totalorder %s26_s29, 4   ;;  %s6149_s28 = smov %s6151_s30 }
 0x7e2   :  { %25 = sbr.rel (!%p23_p10) target bundleno = 5 (0x5), region = 130 }
 0x7e9   :  { %3378 = vsyncpa [#allocation8], 1 }
 0x7ea   :  { %3380 = vsyncpa [#allocation8 + $0x1], 1 }

</bundles_post_ra>
